<compile_context>
chip_gen: v7x
topology: tpu7x:2x2x1
jax: 0.10.0
libtpu: 0.0.40
codegen_flags: <defaults>
</compile_context>

<pallas_src>
import functools
import math

import jax
import jax.numpy as jnp
from jax import lax
from jax.experimental import pallas as pl
from jax.experimental.pallas import tpu as pltpu

IN_DIM = 1028
K_MAIN = 1024                 # MXU-aligned part of the layer-1 contraction
K_TAIL = IN_DIM - K_MAIN      # 4-feature tail, done as one tiny K=4 matmul
H1 = 512
H2 = 128
OUT_DIM = 2
OUT_ROWS = 8                  # sublane-padded rows of the transposed (OUT, B) output
NEG_SLOPE = 0.01              # torch.nn.LeakyReLU default
DEFAULT_TB = 1024             # max batch tile


def _round_up(x, m):
    return ((x + m - 1) // m) * m


def _cdiv(a, b):
    return -(-a // b)


def _leaky_relu(x):
    return jnp.where(x > 0, x, NEG_SLOPE * x)


def andecoder_kernel(z_ref, w1m_ref, w1t_ref, b1_ref, w2_ref, b2_ref,
                     w3t_ref, b3t_ref, o_ref):
    # ---- layer 1: K=1024 on the MXU (bf16 operands, f32 accumulate) ----
    h = jnp.dot(z_ref[:, :K_MAIN].astype(jnp.bfloat16), w1m_ref[...],
                preferred_element_type=jnp.float32)
    # 4-feature tail as one small K=4 matmul (f32), replacing the old VPU loop.
    h = h + lax.dot_general(z_ref[:, K_MAIN:], w1t_ref[...],
                            (((1,), (0,)), ((), ())),
                            preferred_element_type=jnp.float32)
    h = _leaky_relu(h + b1_ref[...])
    # ---- layer 2 ----
    h = jnp.dot(h.astype(jnp.bfloat16), w2_ref[...],
                preferred_element_type=jnp.float32)
    h = _leaky_relu(h + b2_ref[...])
    # ---- layer 3, computed transposed: (OUT_ROWS, TB) lane-dense store ----
    # w3t (8,128) x h (TB,128)^T  (standard q@k^T-style contraction on last dims)
    o = lax.dot_general(w3t_ref[...], h.astype(jnp.bfloat16),
                        (((1,), (1,)), ((), ())),
                        preferred_element_type=jnp.float32)       # (8, TB)
    o_ref[...] = (o + b3t_ref[...]).astype(o_ref.dtype)


def _pick_batch_tile(B, block_b):
    """Single full-extent block for small B; else a multiple-of-128 tile with >=2 steps."""
    if B <= 128:
        return B                                   # block == full array -> no (8,128) rule
    tb = min(block_b, _round_up(_cdiv(B, 2), 128))  # guarantees >= 2 grid steps (megacore)
    return max(128, (tb // 128) * 128)


@functools.partial(jax.jit, static_argnames=("block_b",))
def andecoder_forward(z, params, *, block_b=DEFAULT_TB):
    w1m, w1t, b1, w2, b2, w3t, b3t = params
    B = z.shape[0]
    tb = _pick_batch_tile(B, block_b)
    grid = (_cdiv(B, tb),)                          # last block may be partial (masked)

    const = lambda i: (0, 0)

    flops = 2 * B * (IN_DIM * H1 + H1 * H2 + H2 * OUT_DIM)
    bytes_accessed = (B * IN_DIM * 4 + B * OUT_ROWS * 4
                      + w1m.size * 2 + w1t.size * 4 + w2.size * 2 + w3t.size * 2
                      + (b1.size + b2.size + b3t.size) * 4)

    out = pl.pallas_call(
        andecoder_kernel,
        out_shape=jax.ShapeDtypeStruct((OUT_ROWS, B), jnp.float32),
        grid=grid,
        in_specs=[
            pl.BlockSpec((tb, IN_DIM), lambda i: (i, 0)),   # z, streamed per batch tile
            pl.BlockSpec((K_MAIN, H1), const),              # w1 main (bf16), VMEM-resident
            pl.BlockSpec((K_TAIL, H1), const),              # w1 tail (f32)
            pl.BlockSpec((1, H1), const),                   # b1
            pl.BlockSpec((H1, H2), const),                  # w2 (bf16)
            pl.BlockSpec((1, H2), const),                   # b2
            pl.BlockSpec((OUT_ROWS, H2), const),            # w3 transposed + padded (bf16)
            pl.BlockSpec((OUT_ROWS, 1), const),             # b3 transposed + padded
        ],
        out_specs=pl.BlockSpec((OUT_ROWS, tb), lambda i: (0, i)),
        compiler_params=pltpu.CompilerParams(
            dimension_semantics=("parallel",),
            vmem_limit_bytes=32 * 1024 * 1024),
        cost_estimate=pl.CostEstimate(
            flops=flops, transcendentals=0, bytes_accessed=bytes_accessed),
    )(z, w1m, w1t, b1, w2, b2, w3t, b3t)
    # matches PyTorch's `return z.view(-1)` on the (B, 2) result
    return out[:OUT_DIM, :].T.reshape(-1)


def init_params(key):
    """torch.nn.Linear-style init; weights stored [in, out] (transpose of torch)."""
    def linear_init(k, fan_in, fan_out):
        kw, kb = jax.random.split(k)
        bound = 1.0 / math.sqrt(fan_in)
        w = jax.random.uniform(kw, (fan_in, fan_out), jnp.float32, -bound, bound)
        b = jax.random.uniform(kb, (fan_out,), jnp.float32, -bound, bound)
        return w, b

    k1, k2, k3 = jax.random.split(key, 3)
    w1, b1 = linear_init(k1, IN_DIM, H1)
    w2, b2 = linear_init(k2, H1, H2)
    w3, b3 = linear_init(k3, H2, OUT_DIM)

    w1m = w1[:K_MAIN].astype(jnp.bfloat16)                 # (1024, 512)
    w1t = w1[K_MAIN:]                                      # (4, 512) f32
    w2b = w2.astype(jnp.bfloat16)                          # (512, 128)
    # layer-3 weight/bias stored transposed and sublane-padded to 8 rows
    w3t = jnp.zeros((OUT_ROWS, H2), jnp.bfloat16).at[:OUT_DIM, :].set(
        w3.T.astype(jnp.bfloat16))                         # (8, 128)
    b3t = jnp.zeros((OUT_ROWS, 1), jnp.float32).at[:OUT_DIM, 0].set(b3)
    return (w1m, w1t, b1.reshape(1, H1), w2b, b2.reshape(1, H2), w3t, b3t)


def reference_forward(z, params):
    """Pure-JAX reference using the same bf16 operand casting as the kernel."""
    w1m, w1t, b1, w2, b2, w3t, b3t = params
    h = jnp.dot(z[:, :K_MAIN].astype(jnp.bfloat16), w1m,
                preferred_element_type=jnp.float32)
    h = h + z[:, K_MAIN:] @ w1t
    h = _leaky_relu(h + b1)
    h = jnp.dot(h.astype(jnp.bfloat16), w2, preferred_element_type=jnp.float32)
    h = _leaky_relu(h + b2)
    o = jnp.dot(h.astype(jnp.bfloat16), w3t.T,
                preferred_element_type=jnp.float32) + b3t.T    # (B, 8)
    return o[:, :OUT_DIM].reshape(-1)


if __name__ == "__main__":
    key = jax.random.PRNGKey(0)
    k_params, k_z1, k_z2 = jax.random.split(key, 3)
    params = init_params(k_params)

    # small batch: single full-extent block, grid=(1,)
    B1 = 8
    z1 = jax.random.normal(k_z1, (B1, IN_DIM), jnp.float32)
    out1 = jax.block_until_ready(andecoder_forward(z1, params))
    ref1 = reference_forward(z1, params)
    assert out1.shape == (B1 * OUT_DIM,)
    assert jnp.allclose(out1, ref1, atol=1e-2, rtol=1e-2), \
        f"max abs err {float(jnp.max(jnp.abs(out1 - ref1)))}"

    # non-divisible batch: tb=128, grid=(2,), partial (masked) last block
    B2 = 200
    z2 = jax.random.normal(k_z2, (B2, IN_DIM), jnp.float32)
    out2 = jax.block_until_ready(andecoder_forward(z2, params))
    ref2 = reference_forward(z2, params)
    assert out2.shape == (B2 * OUT_DIM,)
    assert jnp.allclose(out2, ref2, atol=1e-2, rtol=1e-2), \
        f"max abs err {float(jnp.max(jnp.abs(out2 - ref2)))}"

    print("KERNEL_OK")
</pallas_src>

<mosaic_0001>
module attributes {stable_mosaic.version = 11 : i64} {
  func.func @andecoder_kernel(%arg0: i32, %arg1: memref<8x1028xf32, #tpu.memory_space<vmem>>, %arg2: memref<1024x512xbf16, #tpu.memory_space<vmem>>, %arg3: memref<4x512xf32, #tpu.memory_space<vmem>>, %arg4: memref<1x512xf32, #tpu.memory_space<vmem>>, %arg5: memref<512x128xbf16, #tpu.memory_space<vmem>>, %arg6: memref<1x128xf32, #tpu.memory_space<vmem>>, %arg7: memref<8x128xbf16, #tpu.memory_space<vmem>>, %arg8: memref<8x1xf32, #tpu.memory_space<vmem>>, %arg9: memref<8x8xf32, #tpu.memory_space<vmem>>) attributes {dimension_semantics = [#tpu.dimension_semantics<parallel>], iteration_bounds = array<i64: 1>, scalar_prefetch = 0 : i64, scratch_operands = 0 : i64, tpu.core_type = #tpu.core_type<tc>, window_params = [{transform_indices = @transform_0, window_bounds = array<i64: 8, 1028>}, {pipeline_mode = #tpu.pipeline_mode<synchronous>, transform_indices = @transform_1, window_bounds = array<i64: 1024, 512>}, {pipeline_mode = #tpu.pipeline_mode<synchronous>, transform_indices = @transform_2, window_bounds = array<i64: 4, 512>}, {pipeline_mode = #tpu.pipeline_mode<synchronous>, transform_indices = @transform_3, window_bounds = array<i64: 1, 512>}, {pipeline_mode = #tpu.pipeline_mode<synchronous>, transform_indices = @transform_4, window_bounds = array<i64: 512, 128>}, {pipeline_mode = #tpu.pipeline_mode<synchronous>, transform_indices = @transform_5, window_bounds = array<i64: 1, 128>}, {pipeline_mode = #tpu.pipeline_mode<synchronous>, transform_indices = @transform_6, window_bounds = array<i64: 8, 128>}, {pipeline_mode = #tpu.pipeline_mode<synchronous>, transform_indices = @transform_7, window_bounds = array<i64: 8, 1>}, {transform_indices = @transform_8, window_bounds = array<i64: 8, 8>}]} {
    %c0 = arith.constant 0 : index
    %c0_0 = arith.constant 0 : index
    %0 = vector.load %arg1[%c0, %c0_0] : memref<8x1028xf32, #tpu.memory_space<vmem>>, vector<8x1024xf32>
    %1 = arith.truncf %0 : vector<8x1024xf32> to vector<8x1024xbf16>
    %c0_1 = arith.constant 0 : index
    %c0_2 = arith.constant 0 : index
    %2 = vector.load %arg2[%c0_1, %c0_2] : memref<1024x512xbf16, #tpu.memory_space<vmem>>, vector<1024x512xbf16>
    %cst = arith.constant dense<0.000000e+00> : vector<8x512xf32>
    %3 = tpu.matmul %1, %2, %cst {dimension_numbers = #tpu.dot_dimension_numbers<[1], [0], [0], [1], [0, 0, 1, 1], [], []>} : vector<8x1024xbf16>, vector<1024x512xbf16>, vector<8x512xf32> -> vector<8x512xf32>
    %c0_3 = arith.constant 0 : index
    %c1024 = arith.constant 1024 : index
    %4 = vector.load %arg1[%c0_3, %c1024] : memref<8x1028xf32, #tpu.memory_space<vmem>>, vector<8x4xf32>
    %c0_4 = arith.constant 0 : index
    %c0_5 = arith.constant 0 : index
    %5 = vector.load %arg3[%c0_4, %c0_5] : memref<4x512xf32, #tpu.memory_space<vmem>>, vector<4x512xf32>
    %cst_6 = arith.constant dense<0.000000e+00> : vector<8x512xf32>
    %6 = tpu.matmul %4, %5, %cst_6 {dimension_numbers = #tpu.dot_dimension_numbers<[1], [0], [0], [1], [0, 0, 1, 1], [], []>} : vector<8x4xf32>, vector<4x512xf32>, vector<8x512xf32> -> vector<8x512xf32>
    %7 = arith.addf %3, %6 : vector<8x512xf32>
    %c0_7 = arith.constant 0 : index
    %c0_8 = arith.constant 0 : index
    %8 = vector.load %arg4[%c0_7, %c0_8] : memref<1x512xf32, #tpu.memory_space<vmem>>, vector<1x512xf32>
    %9 = vector.broadcast %8 : vector<1x512xf32> to vector<8x512xf32>
    %10 = arith.addf %7, %9 : vector<8x512xf32>
    %cst_9 = arith.constant 0.000000e+00 : f32
    %11 = vector.broadcast %cst_9 : f32 to vector<8x512xf32>
    %12 = arith.cmpf ogt, %10, %11 : vector<8x512xf32>
    %cst_10 = arith.constant 0.00999999977 : f32
    %13 = vector.broadcast %cst_10 : f32 to vector<8x512xf32>
    %14 = arith.mulf %13, %10 : vector<8x512xf32>
    %15 = arith.select %12, %10, %14 : vector<8x512xi1>, vector<8x512xf32>
    %16 = arith.truncf %15 : vector<8x512xf32> to vector<8x512xbf16>
    %c0_11 = arith.constant 0 : index
    %c0_12 = arith.constant 0 : index
    %17 = vector.load %arg5[%c0_11, %c0_12] : memref<512x128xbf16, #tpu.memory_space<vmem>>, vector<512x128xbf16>
    %cst_13 = arith.constant dense<0.000000e+00> : vector<8x128xf32>
    %18 = tpu.matmul %16, %17, %cst_13 {dimension_numbers = #tpu.dot_dimension_numbers<[1], [0], [0], [1], [0, 0, 1, 1], [], []>} : vector<8x512xbf16>, vector<512x128xbf16>, vector<8x128xf32> -> vector<8x128xf32>
    %c0_14 = arith.constant 0 : index
    %c0_15 = arith.constant 0 : index
    %19 = vector.load %arg6[%c0_14, %c0_15] : memref<1x128xf32, #tpu.memory_space<vmem>>, vector<1x128xf32>
    %20 = vector.broadcast %19 : vector<1x128xf32> to vector<8x128xf32>
    %21 = arith.addf %18, %20 : vector<8x128xf32>
    %cst_16 = arith.constant 0.000000e+00 : f32
    %22 = vector.broadcast %cst_16 : f32 to vector<8x128xf32>
    %23 = arith.cmpf ogt, %21, %22 : vector<8x128xf32>
    %cst_17 = arith.constant 0.00999999977 : f32
    %24 = vector.broadcast %cst_17 : f32 to vector<8x128xf32>
    %25 = arith.mulf %24, %21 : vector<8x128xf32>
    %26 = arith.select %23, %21, %25 : vector<8x128xi1>, vector<8x128xf32>
    %c0_18 = arith.constant 0 : index
    %c0_19 = arith.constant 0 : index
    %27 = vector.load %arg7[%c0_18, %c0_19] : memref<8x128xbf16, #tpu.memory_space<vmem>>, vector<8x128xbf16>
    %28 = arith.truncf %26 : vector<8x128xf32> to vector<8x128xbf16>
    %cst_20 = arith.constant dense<0.000000e+00> : vector<8x8xf32>
    %29 = tpu.matmul %27, %28, %cst_20 {dimension_numbers = #tpu.dot_dimension_numbers<[1], [1], [0], [0], [0, 0, 1, 0], [], []>} : vector<8x128xbf16>, vector<8x128xbf16>, vector<8x8xf32> -> vector<8x8xf32>
    %c0_21 = arith.constant 0 : index
    %c0_22 = arith.constant 0 : index
    %30 = vector.load %arg8[%c0_21, %c0_22] : memref<8x1xf32, #tpu.memory_space<vmem>>, vector<8x1xf32>
    %31 = vector.broadcast %30 : vector<8x1xf32> to vector<8x8xf32>
    %32 = arith.addf %29, %31 : vector<8x8xf32>
    %c0_23 = arith.constant 0 : index
    %c0_24 = arith.constant 0 : index
    %33 = vector.load %arg9[%c0_23, %c0_24] : memref<8x8xf32, #tpu.memory_space<vmem>>, vector<8x8xf32>
    tpu.vector_store %arg9[%c0_23, %c0_24], %32 {strides = array<i32>} : memref<8x8xf32, #tpu.memory_space<vmem>>, vector<8x8xf32>,
    return
  }
  func.func @transform_0(%arg0: i32) -> (i32, i32) {
    %c0_i32 = arith.constant 0 : i32
    %c0_i32_0 = arith.constant 0 : i32
    return %arg0, %c0_i32 : i32, i32
  }
  func.func @transform_1(%arg0: i32) -> (i32, i32) {
    %c0_i32 = arith.constant 0 : i32
    %c0_i32_0 = arith.constant 0 : i32
    %c0_i32_1 = arith.constant 0 : i32
    return %c0_i32, %c0_i32_0 : i32, i32
  }
  func.func @transform_2(%arg0: i32) -> (i32, i32) {
    %c0_i32 = arith.constant 0 : i32
    %c0_i32_0 = arith.constant 0 : i32
    %c0_i32_1 = arith.constant 0 : i32
    return %c0_i32, %c0_i32_0 : i32, i32
  }
  func.func @transform_3(%arg0: i32) -> (i32, i32) {
    %c0_i32 = arith.constant 0 : i32
    %c0_i32_0 = arith.constant 0 : i32
    %c0_i32_1 = arith.constant 0 : i32
    return %c0_i32, %c0_i32_0 : i32, i32
  }
  func.func @transform_4(%arg0: i32) -> (i32, i32) {
    %c0_i32 = arith.constant 0 : i32
    %c0_i32_0 = arith.constant 0 : i32
    %c0_i32_1 = arith.constant 0 : i32
    return %c0_i32, %c0_i32_0 : i32, i32
  }
  func.func @transform_5(%arg0: i32) -> (i32, i32) {
    %c0_i32 = arith.constant 0 : i32
    %c0_i32_0 = arith.constant 0 : i32
    %c0_i32_1 = arith.constant 0 : i32
    return %c0_i32, %c0_i32_0 : i32, i32
  }
  func.func @transform_6(%arg0: i32) -> (i32, i32) {
    %c0_i32 = arith.constant 0 : i32
    %c0_i32_0 = arith.constant 0 : i32
    %c0_i32_1 = arith.constant 0 : i32
    return %c0_i32, %c0_i32_0 : i32, i32
  }
  func.func @transform_7(%arg0: i32) -> (i32, i32) {
    %c0_i32 = arith.constant 0 : i32
    %c0_i32_0 = arith.constant 0 : i32
    %c0_i32_1 = arith.constant 0 : i32
    return %c0_i32, %c0_i32_0 : i32, i32
  }
  func.func @transform_8(%arg0: i32) -> (i32, i32) {
    %c0_i32 = arith.constant 0 : i32
    %c0_i32_0 = arith.constant 0 : i32
    return %c0_i32, %arg0 : i32, i32
  }
}

</mosaic_0001>

<bundles_post_ra>
// kernel: andecoder_forward.1
= control target key start
LH: loop header
LB: loop body
LE: loop exit
PB: predicated region body
PF: predicated region fallthrough
CT: control target
= control target key end

     0   :  { %13 = vsyncpa [#allocation3], 0  ;;  %s3573_s0 = inlined_call_operand.hbm [shape: f32[8,1028], index: 0, kind: input, shape index: {}]   ;;  %s3574_s1 = inlined_call_operand.hbm [shape: bf16[1024,512], index: 1, kind: input, shape index: {}]   ;;  %s3575_s2 = inlined_call_operand.vmem [shape: f32[4,512], index: 2, kind: input, shape index: {}]   ;;  %s3576_s3 = inlined_call_operand.vmem [shape: f32[1,512], index: 3, kind: input, shape index: {}]   ;;  %s3577_s4 = inlined_call_operand.hbm [shape: bf16[512,128], index: 4, kind: input, shape index: {}]   ;;  %s3578_s5 = inlined_call_operand.vmem [shape: f32[1,128], index: 5, kind: input, shape index: {}]   ;;  %s3579_s6 = inlined_call_operand.vmem [shape: bf16[8,128], index: 6, kind: input, shape index: {}]   ;;  %s3580_s7 = inlined_call_operand.vmem [shape: f32[8,1], index: 7, kind: input, shape index: {}]   ;;  %s3581_s8 = inlined_call_operand.vmem [shape: f32[8,8], index: 8, kind: output, shape index: {}]  }
   0x1   :  { %14 = vsyncpa [#allocation5], 0  ;;  %s3401_s27 = smov [#allocation4]   ;;  %s3331_s9 = scalar_lea.hbm %s3574_s1, 32768 }
   0x2   :  { %s30_s28 = sshll.u32 %s3401_s27, 4  ;;  %p3332_p0 = scmp.ne.s32.totalorder %s3574_s1, %s3331_s9  ;;  %s31_s28 = int_to_ptr.vmem [resolvable:$true] %s30_s28 }
   0x3   :  { %p3335_p1 = scmp.lt.u32.totalorder %s3331_s9, %s3574_s1 }
   0x5   :  { %p3337_p2 = pnand %p3335_p1, %p3332_p0 }
   0x7   :  { %3340 = shalt.err (!%p3337_p2)
}
   0x8   :  { %s3341_s14 = scalar_lea.vmem %s31_s28, 32768  ;;  %p3346_p4 = scmp.lt.s32.totalorder %s31_s28, %s31_s28 }
   0x9   :  { %p3342_p3 = scmp.ne.s32.totalorder %s31_s28, %s3341_s14  ;;  %p3347_p5 = scmp.lt.s32.totalorder %s3341_s14, %s3341_s14 }
   0xb   :  { %p3348_p6 = por %p3347_p5, %p3346_p4 }
   0xd   :  { %p3349_p7 = pnand %p3348_p6, %p3342_p3 }
   0xf   :  { %3352 = shalt.err (!%p3349_p7)
}
  0x10   :  { %s3402_s15 = smov 256   ;;  %s3403_s16 = smov 16  }
  0x11   :  { %36 = dma.hbm_to_vmem [thread:$0]  %s3574_s1, 32768, %s31_s28, [#allocation5], %s3402_s15, %s3402_s15, %s3403_s16  }
  0x12   :  { %s3404_s19 = smov [#allocation2]   ;;  %s3405_s21 = smov [#allocation6]  }
  0x13   :  { %s21_s20 = sshll.u32 %s3404_s19, 4  ;;  %s46_s22 = sshll.u32 %s3405_s21, 4  ;;  %s22_s20 = int_to_ptr.vmem [resolvable:$true] %s21_s20  ;;  %s47_s22 = int_to_ptr.vmem [resolvable:$true] %s46_s22 }
  0x14   :  { %s3353_s25 = scalar_lea.hbm %s3573_s0, 1152 }
  0x15   :  { %p3354_p8 = scmp.ne.s32.totalorder %s3573_s0, %s3353_s25  ;;  %p3357_p9 = scmp.lt.u32.totalorder %s3353_s25, %s3573_s0 }
  0x17   :  { %p3359_p10 = pnand %p3357_p9, %p3354_p8 }
  0x19   :  { %3362 = shalt.err (!%p3359_p10)
}
  0x1a   :  { %s3363_s1 = scalar_lea.vmem %s22_s20, 1152  ;;  %p3368_p12 = scmp.lt.s32.totalorder %s22_s20, %s22_s20 }
  0x1b   :  { %p3364_p11 = scmp.ne.s32.totalorder %s22_s20, %s3363_s1  ;;  %p3369_p13 = scmp.lt.s32.totalorder %s3363_s1, %s3363_s1 }
  0x1d   :  { %p3370_p0 = por %p3369_p13, %p3368_p12 }
  0x1f   :  { %p3371_p1 = pnand %p3370_p0, %p3364_p11 }
  0x21   :  { %3374 = shalt.err (!%p3371_p1)
}
  0x22   :  { %24 = dma.hbm_to_vmem [thread:$0]  %s3573_s0, 1152, %s22_s20, [#allocation3]  }
  0x23   :  { %s3375_s12 = scalar_lea.hbm %s3577_s4, 4096 }
  0x24   :  { %p3376_p2 = scmp.ne.s32.totalorder %s3577_s4, %s3375_s12  ;;  %p3379_p3 = scmp.lt.u32.totalorder %s3375_s12, %s3577_s4 }
  0x26   :  { %p3381_p4 = pnand %p3379_p3, %p3376_p2 }
  0x28   :  { %3384 = shalt.err (!%p3381_p4)
}
  0x29   :  { %s3385_s17 = scalar_lea.vmem %s47_s22, 4096  ;;  %p3390_p6 = scmp.lt.s32.totalorder %s47_s22, %s47_s22 }
  0x2a   :  { %p3386_p5 = scmp.ne.s32.totalorder %s47_s22, %s3385_s17  ;;  %p3391_p7 = scmp.lt.s32.totalorder %s3385_s17, %s3385_s17 }
  0x2c   :  { %p3392_p8 = por %p3391_p7, %p3390_p6 }
  0x2e   :  { %p3393_p9 = pnand %p3392_p8, %p3386_p5 }
  0x30   :  { %3396 = shalt.err (!%p3393_p9)
}
  0x31   :  { %s3406_s0 = smov 64   ;;  %s3407_s18 = smov 4  }
  0x32   :  { %52 = dma.hbm_to_vmem [thread:$0]  %s3577_s4, 4096, %s47_s22, [#allocation5], %s3406_s0, %s3406_s0, %s3407_s18  }
  0x33   :  { %3397 = dma.done.wait [#allocation3], 1152  }
  0x34   :  { %3398 = vsyncadd [#allocation3], 4294966144 }
  0x35   :  { %3399 = dma.done.wait [#allocation5], 36864  }
  0x36   :  { %3400 = vsyncadd [#allocation5], 4294930432  ;;  %v3408_v0 = vmov 0.0   ;;  %v342_v1 = vld [vmem:[%s3575_s2] sm:$0xff]  ;;  %vm352_vm0 = vcmask 1043456   ;;  %vm348_vm1 = vcmask 31744  }
  0x37   :  { %425 = vmatprep.mubr.f32.mxu1 %v3408_v0  ;;  %v346_v2 = vcombine.high %v342_v1, %v342_v1  ;;  %v2914_v3 = vld [vmem:[#allocation4 + $0x4] ss:$16 sps:$4 sm:$0xff]   ;;  %v2916_v4 = vld [vmem:[#allocation4] ss:$16 sps:$4 sm:$0xff]   ;;  %v341_v5 = vld [vmem:[#allocation2 + $0x40] sm:$0xff]  ;;  %vm3409_vm6 = vmmov 0  }
  0x38   :  { %v343_v6 = vld [vmem:[%s3575_s2 + $0x8] sm:$0xff]  ;;  %1783 = vmatprep.subr.bf16.mxu0 %v2914_v3  ;;  %v72_v54 = vld [vmem:[#allocation2 + $0x18] sm:$0xff]  ;;  %vm2547_vm8 = vcmask 64512  }
  0x39   :  { %2555 = vmatprep.subr.msk.mxu1 %vm352_vm0, %v346_v2  ;;  %v347_v7 = vcombine.high %v343_v6, %v343_v6  ;;  %v2918_v8 = vld [vmem:[#allocation4 + $0x24] ss:$16 sps:$4 sm:$0xff]   ;;  %1784 = vmatpush1.bf16.msra.mxu0 %v2916_v4  ;;  %v2920_v9 = vld [vmem:[#allocation4 + $0x20] ss:$16 sps:$4 sm:$0xff]   ;;  %v3509_v56 = vpack.c.bf16 %v72_v54, %v72_v54 }
  0x3a   :  { %2556 = vmatpush1.msk.msra.mxu1 %vm352_vm0, %v342_v1  ;;  %v2923_v10 = vld [vmem:[#allocation4 + $0x204] ss:$16 sps:$4 sm:$0xff]   ;;  %1785 = vmatprep.subr.bf16.mxu0 %v2918_v8  ;;  %v2921_v12 = vld [vmem:[#allocation4 + $0x200] ss:$16 sps:$4 sm:$0xff]   ;;  %v69_v8 = vld [vmem:[#allocation2] sm:$0xff] }
  0x3b   :  { %2557 = vmatmul.mubr.msk.f32.vlgmr.msra.gmra.mrb[0].mxu1 %vm348_vm1, %v341_v5  ;;  %2558 = vmatprep.subr.msk.mxu1 %vm352_vm0, %v347_v7  ;;  %v2924_v11 = vld [vmem:[#allocation4 + $0x44] ss:$16 sps:$4 sm:$0xff]   ;;  %v2926_v14 = vld [vmem:[#allocation4 + $0x40] ss:$16 sps:$4 sm:$0xff]  }
  0x3c   :  { %2559 = vmatpush1.msk.msra.mxu1 %vm352_vm0, %v343_v6  ;;  %496 = vmatprep.mubr.f32.mxu1 %v3408_v0  ;;  %v2929_v13 = vld [vmem:[#allocation4 + $0x224] ss:$16 sps:$4 sm:$0xff]   ;;  %v2927_v16 = vld [vmem:[#allocation4 + $0x220] ss:$16 sps:$4 sm:$0xff]  }
  0x3d   :  { %1824 = vmatprep.subr.bf16.mxu1 %v2923_v10  ;;  %1786 = vmatpush1.bf16.msra.mxu0 %v2920_v9  ;;  %v2930_v15 = vld [vmem:[#allocation4 + $0x64] ss:$16 sps:$4 sm:$0xff]   ;;  %v2932_v18 = vld [vmem:[#allocation4 + $0x60] ss:$16 sps:$4 sm:$0xff]  }
  0x3e   :  { %1787 = vmatprep.subr.bf16.mxu0 %v2924_v11  ;;  %v2935_v17 = vld [vmem:[#allocation4 + $0x244] ss:$16 sps:$4 sm:$0xff]   ;;  %v2933_v20 = vld [vmem:[#allocation4 + $0x240] ss:$16 sps:$4 sm:$0xff]   ;;  %v3512_v11 = vpack.c.bf16 %v69_v8, %v69_v8 }
  0x3f   :  { %2560 = vmatmul.mubr.msk.f32.vlgmr.msra.gmra.mrb[2].mxu1 %vm348_vm1, %v341_v5  ;;  %v2936_v19 = vld [vmem:[#allocation4 + $0x84] ss:$16 sps:$4 sm:$0xff]   ;;  %v2938_v22 = vld [vmem:[#allocation4 + $0x80] ss:$16 sps:$4 sm:$0xff]  }
  0x40   :  { %1825 = vmatpush1.bf16.msra.mxu1 %v2921_v12  ;;  %v2941_v21 = vld [vmem:[#allocation4 + $0x264] ss:$16 sps:$4 sm:$0xff]   ;;  %v2939_v24 = vld [vmem:[#allocation4 + $0x260] ss:$16 sps:$4 sm:$0xff]   ;;  %1856 = vmatprep.mubr.bf16.mxu1 %v3509_v56 }
  0x41   :  { %1826 = vmatprep.subr.bf16.mxu1 %v2929_v13  ;;  %1788 = vmatpush1.bf16.msra.mxu0 %v2926_v14  ;;  %v2942_v23 = vld [vmem:[#allocation4 + $0xa4] ss:$16 sps:$4 sm:$0xff]   ;;  %v2944_v26 = vld [vmem:[#allocation4 + $0xa0] ss:$16 sps:$4 sm:$0xff]  }
  0x42   :  { %1789 = vmatprep.subr.bf16.mxu0 %v2930_v15  ;;  %v2947_v25 = vld [vmem:[#allocation4 + $0x284] ss:$16 sps:$4 sm:$0xff]   ;;  %v2945_v28 = vld [vmem:[#allocation4 + $0x280] ss:$16 sps:$4 sm:$0xff]  }
  0x43   :  { %v2948_v27 = vld [vmem:[#allocation4 + $0xc4] ss:$16 sps:$4 sm:$0xff]   ;;  %v2950_v30 = vld [vmem:[#allocation4 + $0xc0] ss:$16 sps:$4 sm:$0xff]  }
  0x44   :  { %1827 = vmatpush1.bf16.msra.mxu1 %v2927_v16  ;;  %v2953_v29 = vld [vmem:[#allocation4 + $0x2a4] ss:$16 sps:$4 sm:$0xff]   ;;  %v2951_v32 = vld [vmem:[#allocation4 + $0x2a0] ss:$16 sps:$4 sm:$0xff]   ;;  %v71_v16 = vld [vmem:[#allocation2 + $0x10] sm:$0xff] }
  0x45   :  { %1828 = vmatprep.subr.bf16.mxu1 %v2935_v17  ;;  %1790 = vmatpush1.bf16.msra.mxu0 %v2932_v18  ;;  %v2954_v31 = vld [vmem:[#allocation4 + $0xe4] ss:$16 sps:$4 sm:$0xff]   ;;  %v2956_v34 = vld [vmem:[#allocation4 + $0xe0] ss:$16 sps:$4 sm:$0xff]  }
  0x46   :  { %1791 = vmatprep.subr.bf16.mxu0 %v2936_v19  ;;  %v2959_v33 = vld [vmem:[#allocation4 + $0x2c4] ss:$16 sps:$4 sm:$0xff]   ;;  %v2957_v36 = vld [vmem:[#allocation4 + $0x2c0] ss:$16 sps:$4 sm:$0xff]   ;;  %v3515_v19 = vpack.c.bf16 %v71_v16, %v71_v16 }
  0x47   :  { %v2960_v35 = vld [vmem:[#allocation4 + $0x104] ss:$16 sps:$4 sm:$0xff]   ;;  %v2962_v38 = vld [vmem:[#allocation4 + $0x100] ss:$16 sps:$4 sm:$0xff]  }
  0x48   :  { %1829 = vmatpush1.bf16.msra.mxu1 %v2933_v20  ;;  %v2965_v37 = vld [vmem:[#allocation4 + $0x2e4] ss:$16 sps:$4 sm:$0xff]   ;;  %v2963_v40 = vld [vmem:[#allocation4 + $0x2e0] ss:$16 sps:$4 sm:$0xff]  }
  0x49   :  { %1830 = vmatprep.subr.bf16.mxu1 %v2941_v21  ;;  %1792 = vmatpush1.bf16.msra.mxu0 %v2938_v22  ;;  %v2966_v39 = vld [vmem:[#allocation4 + $0x124] ss:$16 sps:$4 sm:$0xff]   ;;  %v2968_v42 = vld [vmem:[#allocation4 + $0x120] ss:$16 sps:$4 sm:$0xff]  }
  0x4a   :  { %1793 = vmatprep.subr.bf16.mxu0 %v2942_v23  ;;  %v2971_v41 = vld [vmem:[#allocation4 + $0x304] ss:$16 sps:$4 sm:$0xff]   ;;  %v2969_v44 = vld [vmem:[#allocation4 + $0x300] ss:$16 sps:$4 sm:$0xff]  }
  0x4b   :  { %v2972_v43 = vld [vmem:[#allocation4 + $0x144] ss:$16 sps:$4 sm:$0xff]   ;;  %v2974_v46 = vld [vmem:[#allocation4 + $0x140] ss:$16 sps:$4 sm:$0xff]  }
  0x4c   :  { %1831 = vmatpush1.bf16.msra.mxu1 %v2939_v24  ;;  %v2977_v45 = vld [vmem:[#allocation4 + $0x324] ss:$16 sps:$4 sm:$0xff]   ;;  %v2975_v48 = vld [vmem:[#allocation4 + $0x320] ss:$16 sps:$4 sm:$0xff]  }
  0x4d   :  { %1832 = vmatprep.subr.bf16.mxu1 %v2947_v25  ;;  %1794 = vmatpush1.bf16.msra.mxu0 %v2944_v26  ;;  %v2978_v47 = vld [vmem:[#allocation4 + $0x164] ss:$16 sps:$4 sm:$0xff]   ;;  %v2980_v52 = vld [vmem:[#allocation4 + $0x160] ss:$16 sps:$4 sm:$0xff]  }
  0x4e   :  { %1795 = vmatprep.subr.bf16.mxu0 %v2948_v27  ;;  %v70_v49 = vld [vmem:[#allocation2 + $0x8] sm:$0xff] }
  0x4f   :  { %v2983_v50 = vld [vmem:[#allocation4 + $0x344] ss:$16 sps:$4 sm:$0xff]   ;;  %v3506_v51 = vpack.c.bf16 %v70_v49, %v70_v49  ;;  %v2981_v55 = vld [vmem:[#allocation4 + $0x340] ss:$16 sps:$4 sm:$0xff]  }
  0x50   :  { %1833 = vmatpush1.bf16.msra.mxu1 %v2945_v28  ;;  %v2984_v53 = vld [vmem:[#allocation4 + $0x184] ss:$16 sps:$4 sm:$0xff]   ;;  %v2986_v58 = vld [vmem:[#allocation4 + $0x180] ss:$16 sps:$4 sm:$0xff]  }
  0x51   :  { %1834 = vmatprep.subr.bf16.mxu1 %v2953_v29  ;;  %1796 = vmatpush1.bf16.msra.mxu0 %v2950_v30  ;;  %v2989_v57 = vld [vmem:[#allocation4 + $0x364] ss:$16 sps:$4 sm:$0xff]   ;;  %v2987_v60 = vld [vmem:[#allocation4 + $0x360] ss:$16 sps:$4 sm:$0xff]  }
  0x52   :  { %1797 = vmatprep.subr.bf16.mxu0 %v2954_v31  ;;  %1815 = vmatprep.mubr.bf16.mxu0 %v3506_v51  ;;  %v2990_v59 = vld [vmem:[#allocation4 + $0x1a4] ss:$16 sps:$4 sm:$0xff]   ;;  %v2992_v62 = vld [vmem:[#allocation4 + $0x1a0] ss:$16 sps:$4 sm:$0xff]  }
  0x53   :  { %v2995_v61 = vld [vmem:[#allocation4 + $0x384] ss:$16 sps:$4 sm:$0xff]   ;;  %v2993_v1 = vld [vmem:[#allocation4 + $0x380] ss:$16 sps:$4 sm:$0xff]  }
  0x54   :  { %1835 = vmatpush1.bf16.msra.mxu1 %v2951_v32  ;;  %v2996_v63 = vld [vmem:[#allocation4 + $0x1c4] ss:$16 sps:$4 sm:$0xff]   ;;  %v2998_v3 = vld [vmem:[#allocation4 + $0x1c0] ss:$16 sps:$4 sm:$0xff]  }
  0x55   :  { %1836 = vmatprep.subr.bf16.mxu1 %v2959_v33  ;;  %1798 = vmatpush1.bf16.msra.mxu0 %v2956_v34  ;;  %v3001_v2 = vld [vmem:[#allocation4 + $0x3a4] ss:$16 sps:$4 sm:$0xff]   ;;  %v2999_v5 = vld [vmem:[#allocation4 + $0x3a0] ss:$16 sps:$4 sm:$0xff]  }
  0x56   :  { %1799 = vmatprep.subr.bf16.mxu0 %v2960_v35  ;;  %v3002_v4 = vld [vmem:[#allocation4 + $0x1e4] ss:$16 sps:$4 sm:$0xff]   ;;  %v3004_v7 = vld [vmem:[#allocation4 + $0x1e0] ss:$16 sps:$4 sm:$0xff]  }
  0x57   :  { %v3007_v6 = vld [vmem:[#allocation4 + $0x3c4] ss:$16 sps:$4 sm:$0xff]   ;;  %v3005_v10 = vld [vmem:[#allocation4 + $0x3c0] ss:$16 sps:$4 sm:$0xff]  }
  0x58   :  { %1837 = vmatpush1.bf16.msra.mxu1 %v2957_v36  ;;  %v3010_v9 = vld [vmem:[#allocation4 + $0x404] ss:$16 sps:$4 sm:$0xff]   ;;  %v3008_v13 = vld [vmem:[#allocation4 + $0x400] ss:$16 sps:$4 sm:$0xff]  }
  0x59   :  { %1838 = vmatprep.subr.bf16.mxu1 %v2965_v37  ;;  %1800 = vmatpush1.bf16.msra.mxu0 %v2962_v38  ;;  %v3013_v12 = vld [vmem:[#allocation4 + $0x3e4] ss:$16 sps:$4 sm:$0xff]   ;;  %v3011_v14 = vld [vmem:[#allocation4 + $0x3e0] ss:$16 sps:$4 sm:$0xff]  }
  0x5a   :  { %1801 = vmatprep.subr.bf16.mxu0 %v2966_v39  ;;  %v3016_v15 = vld [vmem:[#allocation4 + $0x424] ss:$16 sps:$4 sm:$0xff]   ;;  %v3014_v18 = vld [vmem:[#allocation4 + $0x420] ss:$16 sps:$4 sm:$0xff]  }
  0x5b   :  { %v3019_v17 = vld [vmem:[#allocation4 + $0x604] ss:$16 sps:$4 sm:$0xff]   ;;  %v3017_v21 = vld [vmem:[#allocation4 + $0x600] ss:$16 sps:$4 sm:$0xff]  }
  0x5c   :  { %1839 = vmatpush1.bf16.msra.mxu1 %v2963_v40  ;;  %v3022_v20 = vld [vmem:[#allocation4 + $0x444] ss:$16 sps:$4 sm:$0xff]   ;;  %v3020_v23 = vld [vmem:[#allocation4 + $0x440] ss:$16 sps:$4 sm:$0xff]  }
  0x5d   :  { %1840 = vmatprep.subr.bf16.mxu1 %v2971_v41  ;;  %1802 = vmatpush1.bf16.msra.mxu0 %v2968_v42  ;;  %v3025_v22 = vld [vmem:[#allocation4 + $0x624] ss:$16 sps:$4 sm:$0xff]   ;;  %v3023_v25 = vld [vmem:[#allocation4 + $0x620] ss:$16 sps:$4 sm:$0xff]  }
  0x5e   :  { %1803 = vmatprep.subr.bf16.mxu0 %v2972_v43  ;;  %v3028_v24 = vld [vmem:[#allocation4 + $0x464] ss:$16 sps:$4 sm:$0xff]   ;;  %v3026_v27 = vld [vmem:[#allocation4 + $0x460] ss:$16 sps:$4 sm:$0xff]  }
  0x5f   :  { %v3031_v26 = vld [vmem:[#allocation4 + $0x644] ss:$16 sps:$4 sm:$0xff]   ;;  %v3029_v29 = vld [vmem:[#allocation4 + $0x640] ss:$16 sps:$4 sm:$0xff]  }
  0x60   :  { %1841 = vmatpush1.bf16.msra.mxu1 %v2969_v44  ;;  %v3034_v28 = vld [vmem:[#allocation4 + $0x484] ss:$16 sps:$4 sm:$0xff]   ;;  %v3032_v31 = vld [vmem:[#allocation4 + $0x480] ss:$16 sps:$4 sm:$0xff]  }
  0x61   :  { %1842 = vmatprep.subr.bf16.mxu1 %v2977_v45  ;;  %1804 = vmatpush1.bf16.msra.mxu0 %v2974_v46  ;;  %v3037_v30 = vld [vmem:[#allocation4 + $0x664] ss:$16 sps:$4 sm:$0xff]   ;;  %v3035_v33 = vld [vmem:[#allocation4 + $0x660] ss:$16 sps:$4 sm:$0xff]  }
  0x62   :  { %1805 = vmatprep.subr.bf16.mxu0 %v2978_v47  ;;  %v3040_v32 = vld [vmem:[#allocation4 + $0x4a4] ss:$16 sps:$4 sm:$0xff]   ;;  %v3038_v35 = vld [vmem:[#allocation4 + $0x4a0] ss:$16 sps:$4 sm:$0xff]  }
  0x63   :  { %v3043_v34 = vld [vmem:[#allocation4 + $0x684] ss:$16 sps:$4 sm:$0xff]   ;;  %v3041_v37 = vld [vmem:[#allocation4 + $0x680] ss:$16 sps:$4 sm:$0xff]  }
  0x64   :  { %1843 = vmatpush1.bf16.msra.mxu1 %v2975_v48  ;;  %v3046_v36 = vld [vmem:[#allocation4 + $0x4c4] ss:$16 sps:$4 sm:$0xff]   ;;  %v3044_v41 = vld [vmem:[#allocation4 + $0x4c0] ss:$16 sps:$4 sm:$0xff]  }
  0x65   :  { %1844 = vmatprep.subr.bf16.mxu1 %v2983_v50  ;;  %1806 = vmatpush1.bf16.msra.mxu0 %v2980_v52  ;;  %v74_v38 = vld [vmem:[#allocation2 + $0x28] sm:$0xff]  ;;  %v76_v43 = vld [vmem:[#allocation2 + $0x38] sm:$0xff] }
  0x66   :  { %1807 = vmatprep.subr.bf16.mxu0 %v2984_v53  ;;  %v3049_v39 = vld [vmem:[#allocation4 + $0x6a4] ss:$16 sps:$4 sm:$0xff]   ;;  %v3518_v40 = vpack.c.bf16 %v74_v38, %v74_v38  ;;  %v3047_v44 = vld [vmem:[#allocation4 + $0x6a0] ss:$16 sps:$4 sm:$0xff]   ;;  %v3521_v45 = vpack.c.bf16 %v76_v43, %v76_v43  ;;  %v3119_v38 = vld [vmem:[#allocation4 + $0x228] ss:$16 sps:$4 sm:$0xff]  }
  0x67   :  { %v3052_v42 = vld [vmem:[#allocation4 + $0x4e4] ss:$16 sps:$4 sm:$0xff]   ;;  %v3050_v47 = vld [vmem:[#allocation4 + $0x4e0] ss:$16 sps:$4 sm:$0xff]   ;;  %v3133_v43 = vld [vmem:[#allocation4 + $0x26c] ss:$16 sps:$4 sm:$0xff]  }
  0x68   :  { %1845 = vmatpush1.bf16.msra.mxu1 %v2981_v55  ;;  %v3055_v46 = vld [vmem:[#allocation4 + $0x6c4] ss:$16 sps:$4 sm:$0xff]   ;;  %v3053_v49 = vld [vmem:[#allocation4 + $0x6c0] ss:$16 sps:$4 sm:$0xff]  }
  0x69   :  { %1846 = vmatprep.subr.bf16.mxu1 %v2989_v57  ;;  %1808 = vmatpush1.bf16.msra.mxu0 %v2986_v58  ;;  %v3058_v48 = vld [vmem:[#allocation4 + $0x504] ss:$16 sps:$4 sm:$0xff]   ;;  %v3056_v52 = vld [vmem:[#allocation4 + $0x500] ss:$16 sps:$4 sm:$0xff]  }
  0x6a   :  { %1809 = vmatprep.subr.bf16.mxu0 %v2990_v59  ;;  %v3061_v50 = vld [vmem:[#allocation4 + $0x6e4] ss:$16 sps:$4 sm:$0xff]   ;;  %v3059_v54 = vld [vmem:[#allocation4 + $0x6e0] ss:$16 sps:$4 sm:$0xff]  }
  0x6b   :  { %v3064_v53 = vld [vmem:[#allocation4 + $0x524] ss:$16 sps:$4 sm:$0xff]   ;;  %v3062_v57 = vld [vmem:[#allocation4 + $0x520] ss:$16 sps:$4 sm:$0xff]  }
  0x6c   :  { %1847 = vmatpush1.bf16.msra.mxu1 %v2987_v60  ;;  %v3067_v55 = vld [vmem:[#allocation4 + $0x704] ss:$16 sps:$4 sm:$0xff]   ;;  %v3065_v59 = vld [vmem:[#allocation4 + $0x700] ss:$16 sps:$4 sm:$0xff]  }
  0x6d   :  { %1848 = vmatprep.subr.bf16.mxu1 %v2995_v61  ;;  %1810 = vmatpush1.bf16.msra.mxu0 %v2992_v62  ;;  %v3070_v58 = vld [vmem:[#allocation4 + $0x544] ss:$16 sps:$4 sm:$0xff]   ;;  %v3068_v61 = vld [vmem:[#allocation4 + $0x540] ss:$16 sps:$4 sm:$0xff]  }
  0x6e   :  { %1811 = vmatprep.subr.bf16.mxu0 %v2996_v63  ;;  %v3073_v60 = vld [vmem:[#allocation4 + $0x724] ss:$16 sps:$4 sm:$0xff]   ;;  %v3071_v63 = vld [vmem:[#allocation4 + $0x720] ss:$16 sps:$4 sm:$0xff]  }
  0x6f   :  { %v3076_v62 = vld [vmem:[#allocation4 + $0x564] ss:$16 sps:$4 sm:$0xff]   ;;  %v3083_v8 = vld [vmem:[#allocation4 + $0x760] ss:$16 sps:$4 sm:$0xff]  }
  0x70   :  { %1849 = vmatpush1.bf16.msra.mxu1 %v2993_v1  ;;  %v3079_v1 = vld [vmem:[#allocation4 + $0x744] ss:$16 sps:$4 sm:$0xff]  }
  0x71   :  { %1850 = vmatprep.subr.bf16.mxu1 %v3001_v2  ;;  %1812 = vmatpush1.bf16.msra.mxu0 %v2998_v3  ;;  %v3074_v2 = vld [vmem:[#allocation4 + $0x560] ss:$16 sps:$4 sm:$0xff]   ;;  %v3082_v3 = vld [vmem:[#allocation4 + $0x584] ss:$16 sps:$4 sm:$0xff]  }
  0x72   :  { %1813 = vmatprep.subr.bf16.mxu0 %v3002_v4  ;;  %v3077_v4 = vld [vmem:[#allocation4 + $0x740] ss:$16 sps:$4 sm:$0xff]   ;;  %v3100_v16 = vld [vmem:[#allocation4 + $0x5e4] ss:$16 sps:$4 sm:$0xff]  }
  0x74   :  { %1851 = vmatpush1.bf16.msra.mxu1 %v2999_v5  ;;  %v3085_v5 = vld [vmem:[#allocation4 + $0x764] ss:$16 sps:$4 sm:$0xff]  }
  0x75   :  { %1852 = vmatprep.subr.bf16.mxu1 %v3007_v6  ;;  %1814 = vmatpush1.bf16.msra.mxu0 %v3004_v7  ;;  %v3080_v6 = vld [vmem:[#allocation4 + $0x580] ss:$16 sps:$4 sm:$0xff]   ;;  %v3088_v7 = vld [vmem:[#allocation4 + $0x5a4] ss:$16 sps:$4 sm:$0xff]  }
  0x76   :  { %1865 = vmatprep.subr.bf16.mxu0 %v3010_v9  ;;  %v3091_v9 = vld [vmem:[#allocation4 + $0x784] ss:$16 sps:$4 sm:$0xff]  }
  0x78   :  { %1853 = vmatpush1.bf16.msra.mxu1 %v3005_v10  ;;  %1816 = vmatmul.mubr.bf16.vlgmr.msra.gmra.mrb[0].mxu0 %v3512_v11  ;;  %v3086_v10 = vld [vmem:[#allocation4 + $0x5a0] ss:$16 sps:$4 sm:$0xff]  }
  0x79   :  { %1854 = vmatprep.subr.bf16.mxu1 %v3013_v12  ;;  %1866 = vmatpush1.bf16.msra.mxu0 %v3008_v13  ;;  %v3094_v12 = vld [vmem:[#allocation4 + $0x5c4] ss:$16 sps:$4 sm:$0xff]   ;;  %v3089_v13 = vld [vmem:[#allocation4 + $0x780] ss:$16 sps:$4 sm:$0xff]  }
  0x7a   :  { %1867 = vmatprep.subr.bf16.mxu0 %v3016_v15  ;;  %1897 = vmatprep.mubr.bf16.mxu0 %v3518_v40  ;;  %v3092_v15 = vld [vmem:[#allocation4 + $0x5c0] ss:$16 sps:$4 sm:$0xff]  }
  0x7c   :  { %1855 = vmatpush1.bf16.msra.mxu1 %v3011_v14  ;;  %v3097_v14 = vld [vmem:[#allocation4 + $0x7a4] ss:$16 sps:$4 sm:$0xff]  }
  0x7d   :  { %1906 = vmatprep.subr.bf16.mxu1 %v3019_v17  ;;  %1868 = vmatpush1.bf16.msra.mxu0 %v3014_v18  ;;  %v3095_v17 = vld [vmem:[#allocation4 + $0x7a0] ss:$16 sps:$4 sm:$0xff]   ;;  %v3103_v18 = vld [vmem:[#allocation4 + $0x7c4] ss:$16 sps:$4 sm:$0xff]  }
  0x7e   :  { %1869 = vmatprep.subr.bf16.mxu0 %v3022_v20  ;;  %v3098_v20 = vld [vmem:[#allocation4 + $0x5e0] ss:$16 sps:$4 sm:$0xff]  }
  0x7f   :  { %1857 = vmatmul.mubr.bf16.vlgmr.msra.gmra.mrb[4].mxu1 %v3515_v19 }
  0x80   :  { %1907 = vmatpush1.bf16.msra.mxu1 %v3017_v21  ;;  %1938 = vmatprep.mubr.bf16.mxu1 %v3521_v45  ;;  %v73_v21 = vld [vmem:[#allocation2 + $0x20] sm:$0xff] }
  0x81   :  { %1908 = vmatprep.subr.bf16.mxu1 %v3025_v22  ;;  %1870 = vmatpush1.bf16.msra.mxu0 %v3020_v23  ;;  %v3106_v22 = vld [vmem:[#allocation4 + $0xc] ss:$16 sps:$4 sm:$0xff]   ;;  %v3101_v23 = vld [vmem:[#allocation4 + $0x7c0] ss:$16 sps:$4 sm:$0xff]  }
  0x82   :  { %1871 = vmatprep.subr.bf16.mxu0 %v3028_v24  ;;  %v3524_v24 = vpack.c.bf16 %v73_v21, %v73_v21  ;;  %v3187_v21 = vld [vmem:[#allocation4 + $0x38c] ss:$16 sps:$4 sm:$0xff]  }
  0x84   :  { %1909 = vmatpush1.bf16.msra.mxu1 %v3023_v25  ;;  %v3109_v25 = vld [vmem:[#allocation4 + $0x7e4] ss:$16 sps:$4 sm:$0xff]  }
  0x85   :  { %1910 = vmatprep.subr.bf16.mxu1 %v3031_v26  ;;  %1872 = vmatpush1.bf16.msra.mxu0 %v3026_v27  ;;  %v3104_v26 = vld [vmem:[#allocation4 + $0x8] ss:$16 sps:$4 sm:$0xff]   ;;  %v3107_v27 = vld [vmem:[#allocation4 + $0x7e0] ss:$16 sps:$4 sm:$0xff]  }
  0x86   :  { %1873 = vmatprep.subr.bf16.mxu0 %v3034_v28  ;;  %v3112_v28 = vld [vmem:[#allocation4 + $0x2c] ss:$16 sps:$4 sm:$0xff]  }
  0x88   :  { %1911 = vmatpush1.bf16.msra.mxu1 %v3029_v29  ;;  %v75_v29 = vld [vmem:[#allocation2 + $0x30] sm:$0xff] }
  0x89   :  { %1912 = vmatprep.subr.bf16.mxu1 %v3037_v30  ;;  %1874 = vmatpush1.bf16.msra.mxu0 %v3032_v31  ;;  %v3115_v30 = vld [vmem:[#allocation4 + $0x20c] ss:$16 sps:$4 sm:$0xff]   ;;  %v3110_v31 = vld [vmem:[#allocation4 + $0x28] ss:$16 sps:$4 sm:$0xff]  }
  0x8a   :  { %1875 = vmatprep.subr.bf16.mxu0 %v3040_v32  ;;  %v3528_v32 = vpack.c.bf16 %v75_v29, %v75_v29  ;;  %v3199_v29 = vld [vmem:[#allocation4 + $0x3cc] ss:$16 sps:$4 sm:$0xff]  }
  0x8c   :  { %1913 = vmatpush1.bf16.msra.mxu1 %v3035_v33  ;;  %v3118_v33 = vld [vmem:[#allocation4 + $0x4c] ss:$16 sps:$4 sm:$0xff]  }
  0x8d   :  { %1914 = vmatprep.subr.bf16.mxu1 %v3043_v34  ;;  %1876 = vmatpush1.bf16.msra.mxu0 %v3038_v35  ;;  %v3113_v34 = vld [vmem:[#allocation4 + $0x208] ss:$16 sps:$4 sm:$0xff]   ;;  %v3121_v35 = vld [vmem:[#allocation4 + $0x22c] ss:$16 sps:$4 sm:$0xff]  }
  0x8e   :  { %1877 = vmatprep.subr.bf16.mxu0 %v3046_v36  ;;  %v3116_v36 = vld [vmem:[#allocation4 + $0x48] ss:$16 sps:$4 sm:$0xff]  }
  0x90   :  { %1915 = vmatpush1.bf16.msra.mxu1 %v3041_v37  ;;  %v3124_v37 = vld [vmem:[#allocation4 + $0x6c] ss:$16 sps:$4 sm:$0xff]  }
  0x91   :  { %1916 = vmatprep.subr.bf16.mxu1 %v3049_v39  ;;  %1878 = vmatpush1.bf16.msra.mxu0 %v3044_v41  ;;  %v3122_v39 = vld [vmem:[#allocation4 + $0x68] ss:$16 sps:$4 sm:$0xff]   ;;  %v3130_v41 = vld [vmem:[#allocation4 + $0x8c] ss:$16 sps:$4 sm:$0xff]  }
  0x92   :  { %1879 = vmatprep.subr.bf16.mxu0 %v3052_v42  ;;  %v3125_v42 = vld [vmem:[#allocation4 + $0x248] ss:$16 sps:$4 sm:$0xff]  }
  0x94   :  { %1917 = vmatpush1.bf16.msra.mxu1 %v3047_v44  ;;  %v3128_v44 = vld [vmem:[#allocation4 + $0x88] ss:$16 sps:$4 sm:$0xff]  }
  0x95   :  { %1918 = vmatprep.subr.bf16.mxu1 %v3055_v46  ;;  %1880 = vmatpush1.bf16.msra.mxu0 %v3050_v47  ;;  %v3136_v46 = vld [vmem:[#allocation4 + $0xac] ss:$16 sps:$4 sm:$0xff]   ;;  %v3131_v47 = vld [vmem:[#allocation4 + $0x268] ss:$16 sps:$4 sm:$0xff]  }
  0x96   :  { %1881 = vmatprep.subr.bf16.mxu0 %v3058_v48  ;;  %v3139_v48 = vld [vmem:[#allocation4 + $0x28c] ss:$16 sps:$4 sm:$0xff]  }
  0x98   :  { %1919 = vmatpush1.bf16.msra.mxu1 %v3053_v49  ;;  %v3142_v49 = vld [vmem:[#allocation4 + $0xcc] ss:$16 sps:$4 sm:$0xff]  }
  0x99   :  { %1920 = vmatprep.subr.bf16.mxu1 %v3061_v50  ;;  %1882 = vmatpush1.bf16.msra.mxu0 %v3056_v52  ;;  %v3137_v50 = vld [vmem:[#allocation4 + $0x288] ss:$16 sps:$4 sm:$0xff]   ;;  %v3145_v52 = vld [vmem:[#allocation4 + $0x2ac] ss:$16 sps:$4 sm:$0xff]  }
  0x9a   :  { %1883 = vmatprep.subr.bf16.mxu0 %v3064_v53  ;;  %v3140_v53 = vld [vmem:[#allocation4 + $0xc8] ss:$16 sps:$4 sm:$0xff]  }
  0x9c   :  { %1921 = vmatpush1.bf16.msra.mxu1 %v3059_v54  ;;  %v3148_v54 = vld [vmem:[#allocation4 + $0xec] ss:$16 sps:$4 sm:$0xff]  }
  0x9d   :  { %1922 = vmatprep.subr.bf16.mxu1 %v3067_v55  ;;  %1884 = vmatpush1.bf16.msra.mxu0 %v3062_v57  ;;  %v3143_v55 = vld [vmem:[#allocation4 + $0x2a8] ss:$16 sps:$4 sm:$0xff]   ;;  %v3151_v57 = vld [vmem:[#allocation4 + $0x2cc] ss:$16 sps:$4 sm:$0xff]  }
  0x9e   :  { %1885 = vmatprep.subr.bf16.mxu0 %v3070_v58  ;;  %v3146_v58 = vld [vmem:[#allocation4 + $0xe8] ss:$16 sps:$4 sm:$0xff]  }
  0xa0   :  { %1923 = vmatpush1.bf16.msra.mxu1 %v3065_v59  ;;  %v3154_v59 = vld [vmem:[#allocation4 + $0x10c] ss:$16 sps:$4 sm:$0xff]  }
  0xa1   :  { %1924 = vmatprep.subr.bf16.mxu1 %v3073_v60  ;;  %1886 = vmatpush1.bf16.msra.mxu0 %v3068_v61  ;;  %v3149_v60 = vld [vmem:[#allocation4 + $0x2c8] ss:$16 sps:$4 sm:$0xff]   ;;  %v3157_v61 = vld [vmem:[#allocation4 + $0x2ec] ss:$16 sps:$4 sm:$0xff]  }
  0xa2   :  { %1887 = vmatprep.subr.bf16.mxu0 %v3076_v62  ;;  %v3152_v62 = vld [vmem:[#allocation4 + $0x108] ss:$16 sps:$4 sm:$0xff]  }
  0xa4   :  { %1925 = vmatpush1.bf16.msra.mxu1 %v3071_v63  ;;  %v3160_v63 = vld [vmem:[#allocation4 + $0x12c] ss:$16 sps:$4 sm:$0xff]  }
  0xa5   :  { %1926 = vmatprep.subr.bf16.mxu1 %v3079_v1  ;;  %1888 = vmatpush1.bf16.msra.mxu0 %v3074_v2  ;;  %v3155_v1 = vld [vmem:[#allocation4 + $0x2e8] ss:$16 sps:$4 sm:$0xff]   ;;  %v3163_v2 = vld [vmem:[#allocation4 + $0x30c] ss:$16 sps:$4 sm:$0xff]  }
  0xa6   :  { %1889 = vmatprep.subr.bf16.mxu0 %v3082_v3  ;;  %v3158_v3 = vld [vmem:[#allocation4 + $0x128] ss:$16 sps:$4 sm:$0xff]  }
  0xa8   :  { %1927 = vmatpush1.bf16.msra.mxu1 %v3077_v4  ;;  %v3166_v4 = vld [vmem:[#allocation4 + $0x14c] ss:$16 sps:$4 sm:$0xff]  }
  0xa9   :  { %1928 = vmatprep.subr.bf16.mxu1 %v3085_v5  ;;  %1890 = vmatpush1.bf16.msra.mxu0 %v3080_v6  ;;  %v3161_v5 = vld [vmem:[#allocation4 + $0x308] ss:$16 sps:$4 sm:$0xff]   ;;  %v3169_v6 = vld [vmem:[#allocation4 + $0x32c] ss:$16 sps:$4 sm:$0xff]  }
  0xaa   :  { %1891 = vmatprep.subr.bf16.mxu0 %v3088_v7  ;;  %v3164_v7 = vld [vmem:[#allocation4 + $0x148] ss:$16 sps:$4 sm:$0xff]  }
  0xac   :  { %1929 = vmatpush1.bf16.msra.mxu1 %v3083_v8  ;;  %v3172_v8 = vld [vmem:[#allocation4 + $0x16c] ss:$16 sps:$4 sm:$0xff]  }
  0xad   :  { %1930 = vmatprep.subr.bf16.mxu1 %v3091_v9  ;;  %1892 = vmatpush1.bf16.msra.mxu0 %v3086_v10  ;;  %v3167_v9 = vld [vmem:[#allocation4 + $0x328] ss:$16 sps:$4 sm:$0xff]   ;;  %v3175_v10 = vld [vmem:[#allocation4 + $0x34c] ss:$16 sps:$4 sm:$0xff]  }
  0xae   :  { %1893 = vmatprep.subr.bf16.mxu0 %v3094_v12  ;;  %v3170_v12 = vld [vmem:[#allocation4 + $0x168] ss:$16 sps:$4 sm:$0xff]  }
  0xb0   :  { %1931 = vmatpush1.bf16.msra.mxu1 %v3089_v13  ;;  %v3173_v13 = vld [vmem:[#allocation4 + $0x348] ss:$16 sps:$4 sm:$0xff]  }
  0xb1   :  { %1932 = vmatprep.subr.bf16.mxu1 %v3097_v14  ;;  %1894 = vmatpush1.bf16.msra.mxu0 %v3092_v15  ;;  %v3178_v14 = vld [vmem:[#allocation4 + $0x18c] ss:$16 sps:$4 sm:$0xff]   ;;  %v3176_v15 = vld [vmem:[#allocation4 + $0x188] ss:$16 sps:$4 sm:$0xff]  }
  0xb2   :  { %1895 = vmatprep.subr.bf16.mxu0 %v3100_v16  ;;  %v3181_v16 = vld [vmem:[#allocation4 + $0x36c] ss:$16 sps:$4 sm:$0xff]  }
  0xb4   :  { %1933 = vmatpush1.bf16.msra.mxu1 %v3095_v17  ;;  %v3179_v17 = vld [vmem:[#allocation4 + $0x368] ss:$16 sps:$4 sm:$0xff]  }
  0xb5   :  { %1934 = vmatprep.subr.bf16.mxu1 %v3103_v18  ;;  %1896 = vmatpush1.bf16.msra.mxu0 %v3098_v20  ;;  %v3184_v18 = vld [vmem:[#allocation4 + $0x1ac] ss:$16 sps:$4 sm:$0xff]   ;;  %v3182_v20 = vld [vmem:[#allocation4 + $0x1a8] ss:$16 sps:$4 sm:$0xff]  }
  0xb6   :  { %1947 = vmatprep.subr.bf16.mxu0 %v3106_v22  ;;  %v3185_v22 = vld [vmem:[#allocation4 + $0x388] ss:$16 sps:$4 sm:$0xff]  }
  0xb8   :  { %1935 = vmatpush1.bf16.msra.mxu1 %v3101_v23  ;;  %1898 = vmatmul.mubr.bf16.vlgmr.msra.gmra.mrb[4].mxu0 %v3524_v24  ;;  %v3190_v23 = vld [vmem:[#allocation4 + $0x1cc] ss:$16 sps:$4 sm:$0xff]  }
  0xb9   :  { %1936 = vmatprep.subr.bf16.mxu1 %v3109_v25  ;;  %1948 = vmatpush1.bf16.msra.mxu0 %v3104_v26  ;;  %v3188_v25 = vld [vmem:[#allocation4 + $0x1c8] ss:$16 sps:$4 sm:$0xff]   ;;  %v3193_v26 = vld [vmem:[#allocation4 + $0x3ac] ss:$16 sps:$4 sm:$0xff]  }
  0xba   :  { %1979 = vmatprep.mubr.bf16.mxu0 %v3506_v51  ;;  %1949 = vmatprep.subr.bf16.mxu0 %v3112_v28  ;;  %v3127_v51 = vld [vmem:[#allocation4 + $0x24c] ss:$16 sps:$4 sm:$0xff]   ;;  %v3191_v28 = vld [vmem:[#allocation4 + $0x3a8] ss:$16 sps:$4 sm:$0xff]  }
  0xbc   :  { %1937 = vmatpush1.bf16.msra.mxu1 %v3107_v27  ;;  %v3196_v27 = vld [vmem:[#allocation4 + $0x1ec] ss:$16 sps:$4 sm:$0xff]  }
  0xbd   :  { %1988 = vmatprep.subr.bf16.mxu1 %v3115_v30  ;;  %1950 = vmatpush1.bf16.msra.mxu0 %v3110_v31  ;;  %v3194_v30 = vld [vmem:[#allocation4 + $0x1e8] ss:$16 sps:$4 sm:$0xff]   ;;  %v3202_v31 = vld [vmem:[#allocation4 + $0x40c] ss:$16 sps:$4 sm:$0xff]  }
  0xbe   :  { %1951 = vmatprep.subr.bf16.mxu0 %v3118_v33  ;;  %v3197_v33 = vld [vmem:[#allocation4 + $0x3c8] ss:$16 sps:$4 sm:$0xff]  }
  0xbf   :  { %1939 = vmatmul.mubr.bf16.vlgmr.msra.gmra.mrb[8].mxu1 %v3528_v32 }
  0xc0   :  { %1989 = vmatpush1.bf16.msra.mxu1 %v3113_v34  ;;  %2020 = vmatprep.mubr.bf16.mxu1 %v3509_v56  ;;  %v3134_v56 = vld [vmem:[#allocation4 + $0xa8] ss:$16 sps:$4 sm:$0xff]   ;;  %v3205_v34 = vld [vmem:[#allocation4 + $0x3ec] ss:$16 sps:$4 sm:$0xff]  }
  0xc1   :  { %1990 = vmatprep.subr.bf16.mxu1 %v3121_v35  ;;  %1952 = vmatpush1.bf16.msra.mxu0 %v3116_v36  ;;  %v3200_v35 = vld [vmem:[#allocation4 + $0x408] ss:$16 sps:$4 sm:$0xff]   ;;  %v3208_v36 = vld [vmem:[#allocation4 + $0x42c] ss:$16 sps:$4 sm:$0xff]  }
  0xc2   :  { %1953 = vmatprep.subr.bf16.mxu0 %v3124_v37  ;;  %v3203_v37 = vld [vmem:[#allocation4 + $0x3e8] ss:$16 sps:$4 sm:$0xff]  }
  0xc4   :  { %1991 = vmatpush1.bf16.msra.mxu1 %v3119_v38  ;;  %v3211_v38 = vld [vmem:[#allocation4 + $0x60c] ss:$16 sps:$4 sm:$0xff]  }
  0xc5   :  { %1992 = vmatprep.subr.bf16.mxu1 %v3127_v51  ;;  %1954 = vmatpush1.bf16.msra.mxu0 %v3122_v39  ;;  %v3206_v51 = vld [vmem:[#allocation4 + $0x428] ss:$16 sps:$4 sm:$0xff]   ;;  %v3214_v39 = vld [vmem:[#allocation4 + $0x44c] ss:$16 sps:$4 sm:$0xff]  }
  0xc6   :  { %1955 = vmatprep.subr.bf16.mxu0 %v3130_v41  ;;  %v3209_v41 = vld [vmem:[#allocation4 + $0x608] ss:$16 sps:$4 sm:$0xff]  }
  0xc8   :  { %1993 = vmatpush1.bf16.msra.mxu1 %v3125_v42  ;;  %v3217_v42 = vld [vmem:[#allocation4 + $0x62c] ss:$16 sps:$4 sm:$0xff]  }
  0xc9   :  { %1994 = vmatprep.subr.bf16.mxu1 %v3133_v43  ;;  %1956 = vmatpush1.bf16.msra.mxu0 %v3128_v44  ;;  %v3212_v43 = vld [vmem:[#allocation4 + $0x448] ss:$16 sps:$4 sm:$0xff]   ;;  %v3220_v44 = vld [vmem:[#allocation4 + $0x46c] ss:$16 sps:$4 sm:$0xff]  }
  0xca   :  { %1957 = vmatprep.subr.bf16.mxu0 %v3136_v46  ;;  %v3215_v46 = vld [vmem:[#allocation4 + $0x628] ss:$16 sps:$4 sm:$0xff]  }
  0xcc   :  { %1995 = vmatpush1.bf16.msra.mxu1 %v3131_v47  ;;  %v3218_v47 = vld [vmem:[#allocation4 + $0x468] ss:$16 sps:$4 sm:$0xff]  }
  0xcd   :  { %1996 = vmatprep.subr.bf16.mxu1 %v3139_v48  ;;  %1958 = vmatpush1.bf16.msra.mxu0 %v3134_v56  ;;  %v3221_v48 = vld [vmem:[#allocation4 + $0x648] ss:$16 sps:$4 sm:$0xff]   ;;  %v3229_v56 = vld [vmem:[#allocation4 + $0x66c] ss:$16 sps:$4 sm:$0xff]  }
  0xce   :  { %1959 = vmatprep.subr.bf16.mxu0 %v3142_v49  ;;  %v3224_v49 = vld [vmem:[#allocation4 + $0x488] ss:$16 sps:$4 sm:$0xff]  }
  0xd0   :  { %1997 = vmatpush1.bf16.msra.mxu1 %v3137_v50  ;;  %v3227_v50 = vld [vmem:[#allocation4 + $0x668] ss:$16 sps:$4 sm:$0xff]  }
  0xd1   :  { %1998 = vmatprep.subr.bf16.mxu1 %v3145_v52  ;;  %1960 = vmatpush1.bf16.msra.mxu0 %v3140_v53  ;;  %v3235_v52 = vld [vmem:[#allocation4 + $0x68c] ss:$16 sps:$4 sm:$0xff]  }
  0xd2   :  { %1961 = vmatprep.subr.bf16.mxu0 %v3148_v54  ;;  %v3238_v53 = vld [vmem:[#allocation4 + $0x4cc] ss:$16 sps:$4 sm:$0xff]   ;;  %v3233_v54 = vld [vmem:[#allocation4 + $0x688] ss:$16 sps:$4 sm:$0xff]  }
  0xd4   :  { %1999 = vmatpush1.bf16.msra.mxu1 %v3143_v55  ;;  %v3241_v55 = vld [vmem:[#allocation4 + $0x6ac] ss:$16 sps:$4 sm:$0xff]  }
  0xd5   :  { %2000 = vmatprep.subr.bf16.mxu1 %v3151_v57  ;;  %1962 = vmatpush1.bf16.msra.mxu0 %v3146_v58  ;;  %v3236_v58 = vld [vmem:[#allocation4 + $0x4c8] ss:$16 sps:$4 sm:$0xff]  }
  0xd6   :  { %1963 = vmatprep.subr.bf16.mxu0 %v3154_v59 }
  0xd8   :  { %2001 = vmatpush1.bf16.msra.mxu1 %v3149_v60  ;;  %v3244_v60 = vld [vmem:[#allocation4 + $0x4ec] ss:$16 sps:$4 sm:$0xff]  }
  0xd9   :  { %2002 = vmatprep.subr.bf16.mxu1 %v3157_v61  ;;  %1964 = vmatpush1.bf16.msra.mxu0 %v3152_v62  ;;  %v3239_v61 = vld [vmem:[#allocation4 + $0x6a8] ss:$16 sps:$4 sm:$0xff]   ;;  %v3247_v62 = vld [vmem:[#allocation4 + $0x6cc] ss:$16 sps:$4 sm:$0xff]  }
  0xda   :  { %1965 = vmatprep.subr.bf16.mxu0 %v3160_v63 }
  0xdc   :  { %2003 = vmatpush1.bf16.msra.mxu1 %v3155_v1  ;;  %v3242_v1 = vld [vmem:[#allocation4 + $0x4e8] ss:$16 sps:$4 sm:$0xff]  }
  0xdd   :  { %2004 = vmatprep.subr.bf16.mxu1 %v3163_v2  ;;  %1966 = vmatpush1.bf16.msra.mxu0 %v3158_v3  ;;  %v3250_v3 = vld [vmem:[#allocation4 + $0x50c] ss:$16 sps:$4 sm:$0xff]  }
  0xde   :  { %1967 = vmatprep.subr.bf16.mxu0 %v3166_v4  ;;  %v3245_v4 = vld [vmem:[#allocation4 + $0x6c8] ss:$16 sps:$4 sm:$0xff]  }
  0xe0   :  { %2005 = vmatpush1.bf16.msra.mxu1 %v3161_v5  ;;  %v3253_v5 = vld [vmem:[#allocation4 + $0x6ec] ss:$16 sps:$4 sm:$0xff]  }
  0xe1   :  { %2006 = vmatprep.subr.bf16.mxu1 %v3169_v6  ;;  %1968 = vmatpush1.bf16.msra.mxu0 %v3164_v7  ;;  %v3248_v6 = vld [vmem:[#allocation4 + $0x508] ss:$16 sps:$4 sm:$0xff]   ;;  %v3256_v7 = vld [vmem:[#allocation4 + $0x52c] ss:$16 sps:$4 sm:$0xff]  }
  0xe2   :  { %1969 = vmatprep.subr.bf16.mxu0 %v3172_v8  ;;  %v3251_v8 = vld [vmem:[#allocation4 + $0x6e8] ss:$16 sps:$4 sm:$0xff]  }
  0xe4   :  { %2007 = vmatpush1.bf16.msra.mxu1 %v3167_v9  ;;  %v3259_v9 = vld [vmem:[#allocation4 + $0x70c] ss:$16 sps:$4 sm:$0xff]  }
  0xe5   :  { %2008 = vmatprep.subr.bf16.mxu1 %v3175_v10  ;;  %1970 = vmatpush1.bf16.msra.mxu0 %v3170_v12  ;;  %v3254_v10 = vld [vmem:[#allocation4 + $0x528] ss:$16 sps:$4 sm:$0xff]   ;;  %v3262_v12 = vld [vmem:[#allocation4 + $0x54c] ss:$16 sps:$4 sm:$0xff]  }
  0xe6   :  { %1971 = vmatprep.subr.bf16.mxu0 %v3178_v14  ;;  %v3265_v14 = vld [vmem:[#allocation4 + $0x72c] ss:$16 sps:$4 sm:$0xff]  }
  0xe8   :  { %2009 = vmatpush1.bf16.msra.mxu1 %v3173_v13  ;;  %v3257_v13 = vld [vmem:[#allocation4 + $0x708] ss:$16 sps:$4 sm:$0xff]  }
  0xe9   :  { %2010 = vmatprep.subr.bf16.mxu1 %v3181_v16  ;;  %1972 = vmatpush1.bf16.msra.mxu0 %v3176_v15  ;;  %v3260_v15 = vld [vmem:[#allocation4 + $0x548] ss:$16 sps:$4 sm:$0xff]   ;;  %v3268_v16 = vld [vmem:[#allocation4 + $0x56c] ss:$16 sps:$4 sm:$0xff]  }
  0xea   :  { %1973 = vmatprep.subr.bf16.mxu0 %v3184_v18  ;;  %v3271_v18 = vld [vmem:[#allocation4 + $0x74c] ss:$16 sps:$4 sm:$0xff]  }
  0xec   :  { %2011 = vmatpush1.bf16.msra.mxu1 %v3179_v17  ;;  %v3263_v17 = vld [vmem:[#allocation4 + $0x728] ss:$16 sps:$4 sm:$0xff]  }
  0xed   :  { %2012 = vmatprep.subr.bf16.mxu1 %v3187_v21  ;;  %1974 = vmatpush1.bf16.msra.mxu0 %v3182_v20  ;;  %v3266_v20 = vld [vmem:[#allocation4 + $0x568] ss:$16 sps:$4 sm:$0xff]   ;;  %v3274_v21 = vld [vmem:[#allocation4 + $0x58c] ss:$16 sps:$4 sm:$0xff]  }
  0xee   :  { %1975 = vmatprep.subr.bf16.mxu0 %v3190_v23  ;;  %v3277_v23 = vld [vmem:[#allocation4 + $0x76c] ss:$16 sps:$4 sm:$0xff]  }
  0xf0   :  { %2013 = vmatpush1.bf16.msra.mxu1 %v3185_v22  ;;  %v3269_v22 = vld [vmem:[#allocation4 + $0x748] ss:$16 sps:$4 sm:$0xff]  }
  0xf1   :  { %2014 = vmatprep.subr.bf16.mxu1 %v3193_v26  ;;  %1976 = vmatpush1.bf16.msra.mxu0 %v3188_v25  ;;  %v3272_v25 = vld [vmem:[#allocation4 + $0x588] ss:$16 sps:$4 sm:$0xff]   ;;  %v3280_v26 = vld [vmem:[#allocation4 + $0x5ac] ss:$16 sps:$4 sm:$0xff]  }
  0xf2   :  { %1977 = vmatprep.subr.bf16.mxu0 %v3196_v27  ;;  %v3275_v27 = vld [vmem:[#allocation4 + $0x768] ss:$16 sps:$4 sm:$0xff]  }
  0xf4   :  { %2015 = vmatpush1.bf16.msra.mxu1 %v3191_v28  ;;  %v3283_v28 = vld [vmem:[#allocation4 + $0x78c] ss:$16 sps:$4 sm:$0xff]  }
  0xf5   :  { %2016 = vmatprep.subr.bf16.mxu1 %v3199_v29  ;;  %1978 = vmatpush1.bf16.msra.mxu0 %v3194_v30  ;;  %v3278_v29 = vld [vmem:[#allocation4 + $0x5a8] ss:$16 sps:$4 sm:$0xff]   ;;  %v3286_v30 = vld [vmem:[#allocation4 + $0x5cc] ss:$16 sps:$4 sm:$0xff]  }
  0xf6   :  { %2029 = vmatprep.subr.bf16.mxu0 %v3202_v31  ;;  %v3281_v31 = vld [vmem:[#allocation4 + $0x788] ss:$16 sps:$4 sm:$0xff]  }
  0xf8   :  { %2017 = vmatpush1.bf16.msra.mxu1 %v3197_v33  ;;  %1980 = vmatmul.mubr.bf16.vlgmr.msra.gmra.mrb[8].mxu0 %v3512_v11  ;;  %v3223_v11 = vld [vmem:[#allocation4 + $0x64c] ss:$16 sps:$4 sm:$0xff]  }
  0xf9   :  { %2018 = vmatprep.subr.bf16.mxu1 %v3205_v34  ;;  %2030 = vmatpush1.bf16.msra.mxu0 %v3200_v35  ;;  %v3289_v33 = vld [vmem:[#allocation4 + $0x7ac] ss:$16 sps:$4 sm:$0xff]   ;;  %v3284_v34 = vld [vmem:[#allocation4 + $0x5c8] ss:$16 sps:$4 sm:$0xff]  }
  0xfa   :  { %2061 = vmatprep.mubr.bf16.mxu0 %v3518_v40  ;;  %2031 = vmatprep.subr.bf16.mxu0 %v3208_v36  ;;  %v3226_v40 = vld [vmem:[#allocation4 + $0x48c] ss:$16 sps:$4 sm:$0xff]   ;;  %v3287_v36 = vld [vmem:[#allocation4 + $0x7a8] ss:$16 sps:$4 sm:$0xff]  }
  0xfb   :  { %v3292_v35 = vld [vmem:[#allocation4 + $0x5ec] ss:$16 sps:$4 sm:$0xff]  }
  0xfc   :  { %2019 = vmatpush1.bf16.msra.mxu1 %v3203_v37  ;;  %v3295_v37 = vld [vmem:[#allocation4 + $0x7cc] ss:$16 sps:$4 sm:$0xff]  }
  0xfd   :  { %2070 = vmatprep.subr.bf16.mxu1 %v3211_v38  ;;  %2032 = vmatpush1.bf16.msra.mxu0 %v3206_v51  ;;  %v3290_v38 = vld [vmem:[#allocation4 + $0x5e8] ss:$16 sps:$4 sm:$0xff]   ;;  %v3299_v51 = vld [vmem:[#allocation6 + $0x40] sm:$0xff]  }
  0xfe   :  { %2033 = vmatprep.subr.bf16.mxu0 %v3214_v39  ;;  %v3293_v39 = vld [vmem:[#allocation4 + $0x7c8] ss:$16 sps:$4 sm:$0xff]  }
  0xff   :  { %2021 = vmatmul.mubr.bf16.vlgmr.msra.gmra.mrb[12].mxu1 %v3515_v19  ;;  %v3232_v19 = vld [vmem:[#allocation4 + $0x4ac] ss:$16 sps:$4 sm:$0xff]  }
 0x100   :  { %2071 = vmatpush1.bf16.msra.mxu1 %v3209_v41  ;;  %2102 = vmatprep.mubr.bf16.mxu1 %v3521_v45  ;;  %v3230_v45 = vld [vmem:[#allocation4 + $0x4a8] ss:$16 sps:$4 sm:$0xff]   ;;  %v3298_v41 = vld [vmem:[#allocation4 + $0x7ec] ss:$16 sps:$4 sm:$0xff]  }
 0x101   :  { %2072 = vmatprep.subr.bf16.mxu1 %v3217_v42  ;;  %2034 = vmatpush1.bf16.msra.mxu0 %v3212_v43  ;;  %v3300_v42 = vld [vmem:[#allocation6] sm:$0xff]   ;;  %v3301_v43 = vld [vmem:[#allocation6 + $0x48] sm:$0xff]  }
 0x102   :  { %2035 = vmatprep.subr.bf16.mxu0 %v3220_v44  ;;  %v3296_v44 = vld [vmem:[#allocation4 + $0x7e8] ss:$16 sps:$4 sm:$0xff]  }
 0x104   :  { %2073 = vmatpush1.bf16.msra.mxu1 %v3215_v46  ;;  %v3302_v46 = vld [vmem:[#allocation6 + $0x8] sm:$0xff]  }
 0x105   :  { %2074 = vmatprep.subr.bf16.mxu1 %v3223_v11  ;;  %2036 = vmatpush1.bf16.msra.mxu0 %v3218_v47  ;;  %v3303_v11 = vld [vmem:[#allocation6 + $0x50] sm:$0xff]  }
 0x106   :  { %2037 = vmatprep.subr.bf16.mxu0 %v3226_v40  ;;  %v3304_v47 = vld [vmem:[#allocation6 + $0x10] sm:$0xff]   ;;  %v3305_v40 = vld [vmem:[#allocation6 + $0x58] sm:$0xff]  }
 0x108   :  { %2075 = vmatpush1.bf16.msra.mxu1 %v3221_v48  ;;  %v3306_v48 = vld [vmem:[#allocation6 + $0x18] sm:$0xff]  }
 0x109   :  { %2076 = vmatprep.subr.bf16.mxu1 %v3229_v56  ;;  %2038 = vmatpush1.bf16.msra.mxu0 %v3224_v49  ;;  %v3307_v56 = vld [vmem:[#allocation6 + $0x60] sm:$0xff]  }
 0x10a   :  { %2039 = vmatprep.subr.bf16.mxu0 %v3232_v19  ;;  %v3308_v49 = vld [vmem:[#allocation6 + $0x20] sm:$0xff]   ;;  %v3310_v19 = vld [vmem:[#allocation6 + $0x28] sm:$0xff]  }
 0x10c   :  { %2077 = vmatpush1.bf16.msra.mxu1 %v3227_v50  ;;  %v3311_v50 = vld [vmem:[#allocation6 + $0x70] sm:$0xff]  }
 0x10d   :  { %2078 = vmatprep.subr.bf16.mxu1 %v3235_v52  ;;  %2040 = vmatpush1.bf16.msra.mxu0 %v3230_v45 }
 0x10e   :  { %v3536_v57 = vpop.f32.mrb[0].mxu1  ;;  %2041 = vmatprep.subr.bf16.mxu0 %v3238_v53 }
 0x10f   :  { %v3538_v59 = vpop.f32.mrb[1].mxu1 }
 0x110   :  { %2079 = vmatpush1.bf16.msra.mxu1 %v3233_v54 }
 0x111   :  { %2080 = vmatprep.subr.bf16.mxu1 %v3241_v55  ;;  %2042 = vmatpush1.bf16.msra.mxu0 %v3236_v58  ;;  %v3312_v55 = vld [vmem:[#allocation6 + $0x30] sm:$0xff]  }
 0x112   :  { %v3540_v63 = vpop.f32.mrb[2].mxu1  ;;  %2043 = vmatprep.subr.bf16.mxu0 %v3244_v60  ;;  %v3313_v60 = vld [vmem:[#allocation6 + $0x78] sm:$0xff]  }
 0x113   :  { %v3542_v2 = vpop.f32.mrb[3].mxu1 }
 0x114   :  { %2081 = vmatpush1.bf16.msra.mxu1 %v3239_v61 }
 0x115   :  { %2082 = vmatprep.subr.bf16.mxu1 %v3247_v62  ;;  %2044 = vmatpush1.bf16.msra.mxu0 %v3242_v1  ;;  %v3314_v62 = vld [vmem:[#allocation6 + $0x38] sm:$0xff]  }
 0x116   :  { %2045 = vmatprep.subr.bf16.mxu0 %v3250_v3 }
 0x118   :  { %2083 = vmatpush1.bf16.msra.mxu1 %v3245_v4 }
 0x119   :  { %2084 = vmatprep.subr.bf16.mxu1 %v3253_v5  ;;  %2046 = vmatpush1.bf16.msra.mxu0 %v3248_v6 }
 0x11a   :  { %2047 = vmatprep.subr.bf16.mxu0 %v3256_v7  ;;  %v3315_v7 = vld [vmem:[#allocation6 + $0xc0] sm:$0xff]  }
 0x11c   :  { %2085 = vmatpush1.bf16.msra.mxu1 %v3251_v8  ;;  %v3317_v8 = vld [vmem:[#allocation6 + $0xc8] sm:$0xff]  }
 0x11d   :  { %2086 = vmatprep.subr.bf16.mxu1 %v3259_v9  ;;  %2048 = vmatpush1.bf16.msra.mxu0 %v3254_v10  ;;  %v3319_v9 = vld [vmem:[#allocation6 + $0xd0] sm:$0xff]  }
 0x11e   :  { %2049 = vmatprep.subr.bf16.mxu0 %v3262_v12  ;;  %v3320_v10 = vld [vmem:[#allocation6 + $0x90] sm:$0xff]   ;;  %v3321_v12 = vld [vmem:[#allocation6 + $0xd8] sm:$0xff]  }
 0x120   :  { %2087 = vmatpush1.bf16.msra.mxu1 %v3257_v13  ;;  %v3322_v13 = vld [vmem:[#allocation6 + $0x98] sm:$0xff]  }
 0x121   :  { %2088 = vmatprep.subr.bf16.mxu1 %v3265_v14  ;;  %2050 = vmatpush1.bf16.msra.mxu0 %v3260_v15  ;;  %v2113_v14 = vlaneseq }
 0x122   :  { %2051 = vmatprep.subr.bf16.mxu0 %v3268_v16 }
 0x123   :  { %v3549_v15 = vshrl.u32 %v2113_v14, 7 }
 0x124   :  { %2089 = vmatpush1.bf16.msra.mxu1 %v3263_v17  ;;  %v3323_v17 = vld [vmem:[#allocation6 + $0xe0] sm:$0xff]  }
 0x125   :  { %2090 = vmatprep.subr.bf16.mxu1 %v3271_v18  ;;  %2052 = vmatpush1.bf16.msra.mxu0 %v3266_v20 }
 0x126   :  { %2053 = vmatprep.subr.bf16.mxu0 %v3274_v21  ;;  %v2115_v21 = vsub.s32 0, %v3549_v15 }
 0x128   :  { %2091 = vmatpush1.bf16.msra.mxu1 %v3269_v22  ;;  %v3324_v22 = vld [vmem:[#allocation6 + $0xa0] sm:$0xff]  }
 0x129   :  { %2092 = vmatprep.subr.bf16.mxu1 %v3277_v23  ;;  %2054 = vmatpush1.bf16.msra.mxu0 %v3272_v25 }
 0x12a   :  { %2055 = vmatprep.subr.bf16.mxu0 %v3280_v26  ;;  %v2111_v26 = vld [vmem:[%s3576_s3] sm:$0xf] }
 0x12c   :  { %2093 = vmatpush1.bf16.msra.mxu1 %v3275_v27  ;;  %v2119_v27 = vsub.s32 1, %v3549_v15 }
 0x12d   :  { %2094 = vmatprep.subr.bf16.mxu1 %v3283_v28  ;;  %2056 = vmatpush1.bf16.msra.mxu0 %v3278_v29  ;;  %v3325_v29 = vld [vmem:[#allocation6 + $0xe8] sm:$0xff]  }
 0x12e   :  { %2057 = vmatprep.subr.bf16.mxu0 %v3286_v30  ;;  %v2116_v30 = vrot.slane %v2111_v26, %v2115_v21 }
 0x130   :  { %2095 = vmatpush1.bf16.msra.mxu1 %v3281_v31  ;;  %v3326_v31 = vld [vmem:[#allocation6 + $0xa8] sm:$0xff]  }
 0x131   :  { %2096 = vmatprep.subr.bf16.mxu1 %v3289_v33  ;;  %2058 = vmatpush1.bf16.msra.mxu0 %v3284_v34  ;;  %v2120_v34 = vrot.slane %v2111_v26, %v2119_v27 }
 0x132   :  { %2059 = vmatprep.subr.bf16.mxu0 %v3292_v35 }
 0x134   :  { %2097 = vmatpush1.bf16.msra.mxu1 %v3287_v36 }
 0x135   :  { %2098 = vmatprep.subr.bf16.mxu1 %v3295_v37  ;;  %2060 = vmatpush1.bf16.msra.mxu0 %v3290_v38 }
 0x136   :  { %2850 = vmatprep.subr.bf16.mxu0 %v3299_v51  ;;  %v3327_v51 = vld [vmem:[#allocation6 + $0xf0] sm:$0xff]  }
 0x138   :  { %2099 = vmatpush1.bf16.msra.mxu1 %v3293_v39  ;;  %2062 = vmatmul.mubr.bf16.vlgmr.msra.gmra.mrb[12].mxu0 %v3524_v24  ;;  %v3309_v24 = vld [vmem:[#allocation6 + $0x68] sm:$0xff]  }
 0x139   :  { %2100 = vmatprep.subr.bf16.mxu1 %v3298_v41  ;;  %2851 = vmatpush3.bf16.msra.mxu0 %v3300_v42  ;;  %v3328_v42 = vld [vmem:[#allocation6 + $0xb0] sm:$0xff]  }
 0x13a   :  { %2852 = vmatprep.subr.bf16.mxu0 %v3301_v43 }
 0x13c   :  { %2101 = vmatpush1.bf16.msra.mxu1 %v3296_v44 }
 0x13d   :  { %2853 = vmatpush3.bf16.msra.mxu0 %v3302_v46  ;;  %2872 = vmatprep.subr.bf16.mxu1 %v3315_v7 }
 0x13e   :  { %2854 = vmatprep.subr.bf16.mxu0 %v3303_v11  ;;  %v3329_v11 = vld [vmem:[#allocation6 + $0xf8] sm:$0xff]  }
 0x13f   :  { %2103 = vmatmul.mubr.bf16.vlgmr.msra.gmra.mrb[16].mxu1 %v3528_v32 }
 0x141   :  { %2855 = vmatpush3.bf16.msra.mxu0 %v3304_v47 }
 0x142   :  { %2856 = vmatprep.subr.bf16.mxu0 %v3305_v40  ;;  %v3330_v40 = vld [vmem:[#allocation6 + $0xb8] sm:$0xff]  }
 0x145   :  { %2857 = vmatpush3.bf16.msra.mxu0 %v3306_v48 }
 0x146   :  { %2858 = vmatprep.subr.bf16.mxu0 %v3307_v56 }
 0x149   :  { %2859 = vmatpush3.bf16.msra.mxu0 %v3308_v49 }
 0x14a   :  { %2860 = vmatprep.subr.bf16.mxu0 %v3309_v24 }
 0x14b   :  { %v1817_v52 = vpop.f32.mrb[0].mxu0 }
 0x14c   :  { %v1818_v45 = vadd.f32 %v1817_v52, %v3536_v57  ;;  %v1819_v53 = vpop.f32.mrb[1].mxu0  ;;  %v3316_v57 = vld [vmem:[#allocation6 + $0x80] sm:$0xff]  }
 0x14d   :  { %v1820_v32 = vadd.f32 %v1819_v53, %v3538_v59  ;;  %v1821_v54 = vpop.f32.mrb[2].mxu0  ;;  %2861 = vmatpush3.bf16.msra.mxu0 %v3310_v19  ;;  %2873 = vmatpush3.bf16.msra.mxu1 %v3316_v57  ;;  %v3318_v59 = vld [vmem:[#allocation6 + $0x88] sm:$0xff]  }
 0x14e   :  { %v1822_v58 = vpop.f32.mrb[3].mxu0  ;;  %2862 = vmatprep.subr.bf16.mxu0 %v3311_v50  ;;  %2874 = vmatprep.subr.bf16.mxu1 %v3317_v8 }
 0x151   :  { %2863 = vmatpush3.bf16.msra.mxu0 %v3312_v55  ;;  %2875 = vmatpush3.bf16.msra.mxu1 %v3318_v59 }
 0x152   :  { %v1858_v61 = vpop.f32.mrb[4].mxu1  ;;  %2864 = vmatprep.subr.bf16.mxu0 %v3313_v60  ;;  %2876 = vmatprep.subr.bf16.mxu1 %v3319_v9 }
 0x153   :  { %v1859_v1 = vadd.f32 %v1858_v61, %v1818_v45  ;;  %v1860_v3 = vpop.f32.mrb[5].mxu1 }
 0x154   :  { %v1861_v4 = vadd.f32 %v1860_v3, %v1820_v32  ;;  %v1862_v5 = vpop.f32.mrb[6].mxu1 }
 0x155   :  { %v1863_v6 = vpop.f32.mrb[7].mxu1  ;;  %2865 = vmatpush3.bf16.msra.mxu0 %v3314_v62  ;;  %2877 = vmatpush3.bf16.msra.mxu1 %v3320_v10 }
 0x156   :  { %2896 = vmatprep.subr.bf16.mxu0 %v3408_v0  ;;  %2878 = vmatprep.subr.bf16.mxu1 %v3321_v12 }
 0x159   :  { %2879 = vmatpush3.bf16.msra.mxu1 %v3322_v13 }
 0x15a   :  { %2880 = vmatprep.subr.bf16.mxu1 %v3323_v17 }
 0x15d   :  { %2881 = vmatpush3.bf16.msra.mxu1 %v3324_v22 }
 0x15e   :  { %2882 = vmatprep.subr.bf16.mxu1 %v3325_v29  ;;  %v2501_v29 = vld [vmem:[%s3580_s7] sm:$0xff] }
 0x161   :  { %2883 = vmatpush3.bf16.msra.mxu1 %v3326_v31  ;;  %v2817_v31 = vld [vmem:[%s3578_s5] ss:$0 sm:$0xff] }
 0x162   :  { %2884 = vmatprep.subr.bf16.mxu1 %v3327_v51 }
 0x165   :  { %2885 = vmatpush3.bf16.msra.mxu1 %v3328_v42  ;;  %v2499_v42 = vld [vmem:[%s3579_s6] sm:$0xf] }
 0x166   :  { %2886 = vmatprep.subr.bf16.mxu1 %v3329_v11 }
 0x169   :  { %2887 = vmatpush3.bf16.msra.mxu1 %v3330_v40 }
 0x18b   :  { %v1899_v16 = vpop.f32.mrb[4].mxu0 }
 0x18c   :  { %v1900_v18 = vadd.f32 %v1899_v16, %v1859_v1  ;;  %v1901_v20 = vpop.f32.mrb[5].mxu0 }
 0x18d   :  { %v1902_v23 = vadd.f32 %v1901_v20, %v1861_v4  ;;  %v1903_v25 = vpop.f32.mrb[6].mxu0  ;;  %v2123_v4 = vsub.s32 2, %v3549_v15 }
 0x18e   :  { %v1904_v28 = vpop.f32.mrb[7].mxu0 }
 0x18f   :  { %v2124_v57 = vrot.slane %v2111_v26, %v2123_v4 }
 0x192   :  { %v1940_v33 = vpop.f32.mrb[8].mxu1 }
 0x193   :  { %v1941_v35 = vadd.f32 %v1940_v33, %v1900_v18  ;;  %v1942_v36 = vpop.f32.mrb[9].mxu1 }
 0x194   :  { %v1943_v37 = vadd.f32 %v1942_v36, %v1902_v23  ;;  %v1944_v38 = vpop.f32.mrb[10].mxu1 }
 0x195   :  { %v2133_v39 = vadd.f32 %v2116_v30, %v1941_v35  ;;  %v1945_v41 = vpop.f32.mrb[11].mxu1  ;;  %v3410_v30 = vmov 0  }
 0x196   :  { %v2134_v43 = vadd.f32 %v2120_v34, %v1943_v37  ;;  %2912 = vset.pattern.permute.xlu0 %v3410_v30 }
 0x197   :  { %vm2137_vm2 = vcmp.gt.f32.partialorder %v2133_v39, 0.0  ;;  %v2141_v44 = vmul.f32 0.01, %v2133_v39  ;;  %2504 = vperm.xlu0 %2912, %v2501_v29  }
 0x198   :  { %v2142_v46 = vmul.f32 0.01, %v2134_v43  ;;  %vm2138_vm3 = vcmp.gt.f32.partialorder %v2134_v43, 0.0 }
 0x199   :  { %v2145_v47 = vsel %vm2137_vm2, %v2133_v39, %v2141_v44 }
 0x19a   :  { %v2146_v48 = vsel %vm2138_vm3, %v2134_v43, %v2142_v46  ;;  %v2149_v49 = vpack.c.bf16 %v2145_v47, %v2145_v47 }
 0x19b   :  { %v2150_v56 = vpack.c.bf16 %v2146_v48, %v2146_v48 }
 0x19d   :  { %2448 = vmatprep.mubr.bf16.mxu0 %v2150_v56 }
 0x19e   :  { %2449 = vmatmul.mubr.bf16.vlgmr.msra.gmra.mrb[16].mxu0 %v2149_v49 }
 0x19f   :  { %2898 = vmatprep.mubr.msk.bf16.mxu0 %vm3409_vm6, %v3408_v0 }
 0x1cb   :  { %v1981_v24 = vpop.f32.mrb[8].mxu0 }
 0x1cc   :  { %v1982_v19 = vadd.f32 %v1981_v24, %v3540_v63  ;;  %v1983_v50 = vpop.f32.mrb[9].mxu0  ;;  %v2127_v63 = vsub.s32 3, %v3549_v15 }
 0x1cd   :  { %v1984_v52 = vadd.f32 %v1983_v50, %v3542_v2  ;;  %v1985_v45 = vpop.f32.mrb[10].mxu0 }
 0x1ce   :  { %v1986_v53 = vpop.f32.mrb[11].mxu0  ;;  %v2128_v8 = vrot.slane %v2111_v26, %v2127_v63 }
 0x1d2   :  { %v2022_v32 = vpop.f32.mrb[12].mxu1 }
 0x1d3   :  { %v2023_v54 = vadd.f32 %v2022_v32, %v1982_v19  ;;  %v2024_v55 = vpop.f32.mrb[13].mxu1 }
 0x1d4   :  { %v2025_v58 = vadd.f32 %v2024_v55, %v1984_v52  ;;  %v2026_v60 = vpop.f32.mrb[14].mxu1 }
 0x1d5   :  { %v2027_v61 = vpop.f32.mrb[15].mxu1 }
 0x20b   :  { %v2063_v62 = vpop.f32.mrb[12].mxu0 }
 0x20c   :  { %v2064_v1 = vadd.f32 %v2063_v62, %v2023_v54  ;;  %v2065_v3 = vpop.f32.mrb[13].mxu0 }
 0x20d   :  { %v2066_v5 = vadd.f32 %v2065_v3, %v2025_v58  ;;  %v2067_v6 = vpop.f32.mrb[14].mxu0 }
 0x20e   :  { %v2068_v7 = vpop.f32.mrb[15].mxu0 }
 0x212   :  { %v2104_v2 = vpop.f32.mrb[16].mxu1 }
 0x213   :  { %v2105_v59 = vadd.f32 %v2104_v2, %v2064_v1  ;;  %v2106_v9 = vpop.f32.mrb[17].mxu1 }
 0x214   :  { %v2107_v10 = vadd.f32 %v2106_v9, %v2066_v5  ;;  %v2108_v12 = vpop.f32.mrb[18].mxu1 }
 0x215   :  { %v2135_v13 = vadd.f32 %v2124_v57, %v2105_v59  ;;  %v2109_v14 = vpop.f32.mrb[19].mxu1 }
 0x216   :  { %v2136_v16 = vadd.f32 %v2128_v8, %v2107_v10  ;;  %v2505_v43 = vpop.permute.xlu0 %2504 }
 0x217   :  { %vm2139_vm4 = vcmp.gt.f32.partialorder %v2135_v13, 0.0  ;;  %v2143_v17 = vmul.f32 0.01, %v2135_v13 }
 0x218   :  { %v2144_v18 = vmul.f32 0.01, %v2136_v16  ;;  %vm2140_vm5 = vcmp.gt.f32.partialorder %v2136_v16, 0.0 }
 0x219   :  { %v2147_v20 = vsel %vm2139_vm4, %v2135_v13, %v2143_v17 }
 0x21a   :  { %v2148_v21 = vsel %vm2140_vm5, %v2136_v16, %v2144_v18  ;;  %v2151_v23 = vpack.c.bf16 %v2147_v20, %v2147_v20 }
 0x21b   :  { %v2152_v22 = vpack.c.bf16 %v2148_v21, %v2148_v21 }
 0x21d   :  { %2488 = vmatprep.mubr.bf16.mxu1 %v2152_v22 }
 0x21e   :  { %2489 = vmatmul.mubr.bf16.vlgmr.msra.gmra.mrb[20].mxu1 %v2151_v23 }
 0x271   :  { %v2866_v15 = vpop.f32.mrb[16].mxu0 }
 0x272   :  { %v2867_v25 = vpop.f32.mrb[17].mxu0 }
 0x273   :  { %v2868_v26 = vadd.f32 %v2867_v25, %v2866_v15  ;;  %v2869_v27 = vpop.f32.mrb[18].mxu0 }
 0x274   :  { %v2870_v28 = vpop.f32.mrb[19].mxu0 }
 0x275   :  { %v2451_v35 = vadd.f32 %v2868_v26, %v2817_v31 }
 0x2f1   :  { %v2888_v33 = vpop.f32.mrb[20].mxu1 }
 0x2f2   :  { %v2889_v34 = vpop.f32.mrb[21].mxu1 }
 0x2f3   :  { %v2890_v36 = vadd.f32 %v2889_v34, %v2888_v33  ;;  %v2891_v37 = vpop.f32.mrb[22].mxu1 }
 0x2f4   :  { %v2892_v38 = vpop.f32.mrb[23].mxu1 }
 0x2f5   :  { %v2491_v51 = vadd.f32 %v2890_v36, %v2451_v35 }
 0x2f7   :  { %vm2496_vm7 = vcmp.gt.f32.partialorder %v2491_v51, 0.0  ;;  %v2497_v0 = vmul.f32 0.01, %v2491_v51 }
 0x2f9   :  { %v2498_v39 = vsel %vm2496_vm7, %v2491_v51, %v2497_v0 }
 0x2fa   :  { %v2500_v41 = vpack.c.bf16 %v2498_v39, %v2498_v39 }
 0x2fc   :  { %2897 = vmatpush3.bf16.xpose.msra.mxu0 %v2500_v41 }
 0x303   :  { %2899 = vmatmul.mubr.bf16.vlgmr.msra.gmra.mrb[20].mxu0 %v2499_v42 }
 0x3d6   :  { %v2541_v44 = vpop.f32.mrb[20].mxu0 }
 0x3d7   :  { %v2542_v46 = vadd.f32 %v2541_v44, %v2505_v43  ;;  %v2900_v11 = vpop.f32.mrb[21].mxu0 }
 0x3d8   :  { %v2544_v47 = vpop.f32.mrb[22].mxu0 }
 0x3d9   :  { %2548 = vst.msk [vmem:[%s3581_s8] sm:$0xff] %vm2547_vm8, %v2542_v46  ;;  %v2901_v40 = vpop.f32.mrb[23].mxu0 }
 0x3da   :  { %2553 = vsyncpa [#allocation3], 1 }
 0x3db   :  { %2554 = vsyncpa [#allocation5], 1 }

</bundles_post_ra>
